<compile_context>
chip_gen: v5e
topology: v5e:2x2
jax: 0.10.0
libtpu: 0.0.40
codegen_flags: <defaults>
</compile_context>

<pallas_src>
import functools
import math

import numpy as np

import jax
import jax.numpy as jnp
from jax import lax
from jax.experimental import pallas as pl
from jax.experimental.pallas import tpu as pltpu


# --- configuration flags ----------------------------------------------------
# bf16 MXU operands (~2-3x matmul throughput, halves resident W1/W2 VMEM).
# Default False: keeps exact f32 semantics of the PyTorch reference; per the
# review's correctness note, validate per-generation tolerances before enabling.
USE_BF16_MATMUL = False
# tanh-approx GELU moves the transcendental to the EUP slot (off the VPU);
# changes numerics at ~1e-3, so off by default.
USE_TANH_GELU = False

_INV_SQRT2 = 0.7071067811865476


# ---------------------------------------------------------------------------
# In-kernel helpers
# ---------------------------------------------------------------------------
def _layernorm(x, w, b, eps):
    # PyTorch LayerNorm semantics (biased variance, eps inside sqrt).
    # rsqrt routes to the EUP slot instead of a VPU divide + sqrt.
    u = jnp.mean(x, axis=-1, keepdims=True)
    xc = x - u
    s = jnp.mean(xc * xc, axis=-1, keepdims=True)
    return w * (xc * lax.rsqrt(s + eps)) + b


def _gelu(x):
    if USE_TANH_GELU:
        return jax.nn.gelu(x, approximate=True)
    # module-level gelu(): x * 0.5 * (1 + erf(x / sqrt(2)))
    return x * (0.5 * (1.0 + lax.erf(x * _INV_SQRT2)))


# ---------------------------------------------------------------------------
# Pallas kernel: one batch *tile* (TB elements == TB*n rows) per grid step
# ---------------------------------------------------------------------------
def basic_layer_kernel(x_ref,                  # (TB*n, d) activations
                       fwd_ref,                # (2Fp, n)  stacked fwd DFT [cos; -sin]
                       invc_ref, invs_ref,     # (n, Fp)   inverse DFT cos / -sin parts
                       kre_ref, kim_ref,       # (Fp, d)   complex filter (zero padded)
                       ln1w_ref, ln1b_ref,     # (1, d)
                       w1_ref, b1_ref,         # (d, 4d), (1, 4d)
                       w2_ref, b2_ref,         # (4d, d), (1, d)
                       ln2w_ref, ln2b_ref,     # (1, d)
                       o_ref,                  # (TB*n, d)
                       r_sc):                  # VMEM scratch (TB*n, d) f32
    rows, d = x_ref.shape
    n, fp = invc_ref.shape
    tb = rows // n
    mm_dtype = fwd_ref.dtype     # matmul operand dtype, chosen wrapper-side

    x = x_ref[...].astype(jnp.float32)          # (TB*n, d) slab
    fwd = fwd_ref[...]
    invc = invc_ref[...]
    invs = invs_ref[...]
    kre = kre_ref[...]
    kim = kim_ref[...]

    # ----- FilterLayer: rfft -> complex filter -> irfft, per batch element ---
    # Plain 2D MXU matmuls (no broadcast lhs); Fp is a multiple of 8 so the
    # re/im row slices are sublane-tile aligned; no re/im concat (two
    # accumulated inverse matmuls instead).  Residual folded into the store.
    for i in range(tb):                          # static unroll, tb is small
        r0 = i * n
        xi = x[r0:r0 + n, :]                                       # (n, d)
        spec = jnp.dot(fwd, xi.astype(mm_dtype),
                       preferred_element_type=jnp.float32)         # (2Fp, d)
        xre = spec[:fp, :]
        xim = spec[fp:, :]
        yre = xre * kre - xim * kim
        yim = xre * kim + xim * kre
        yi = (jnp.dot(invc, yre.astype(mm_dtype),
                      preferred_element_type=jnp.float32)
              + jnp.dot(invs, yim.astype(mm_dtype),
                        preferred_element_type=jnp.float32))        # (n, d)
        # dropout(p=0.5) -> identity in eval mode
        r_sc[r0:r0 + n, :] = yi + xi

    # ----- residual LN + FFN on the whole (TB*n, d) slab ----------------------
    h = _layernorm(r_sc[...], ln1w_ref[...], ln1b_ref[...], 1e-12)
    z = jnp.dot(h.astype(mm_dtype), w1_ref[...],
                preferred_element_type=jnp.float32) + b1_ref[...]    # (TB*n, 4d)
    z = _gelu(z)
    # TODO(synk): for d_model >= 512 on v7x, pipeline the FFN hidden dim (4d)
    # with an extra "arbitrary" grid axis (accumulate the W2 matmul in a VMEM
    # scratch) so only a slice of W1/W2/z is resident at a time.
    z2 = jnp.dot(z.astype(mm_dtype), w2_ref[...],
                 preferred_element_type=jnp.float32) + b2_ref[...]   # (TB*n, d)
    # dropout(p=0.5) -> identity in eval mode
    out = _layernorm(z2 + h, ln2w_ref[...], ln2b_ref[...], 1e-12)
    # TODO(synk): at d_model < 128 this store is a masked vst at d/128 lane
    # occupancy; a lane-dense (TB, n*d) presentation needs an in-kernel
    # sublane->lane merge (relayout) whose cost must be measured against the
    # masked-store cost.  For production d_model >= 128 the store is already
    # lane-dense and this item is moot.
    o_ref[...] = out.astype(o_ref.dtype)


# ---------------------------------------------------------------------------
# DFT matrix construction (norm='ortho'), precomputed once with numpy.
# ---------------------------------------------------------------------------
def _round_up(v, m):
    return ((v + m - 1) // m) * m


@functools.lru_cache(maxsize=None)
def _dft_matrices(n, fp):
    """Stacked real DFT matrices; rows/cols >= F = n//2+1 are exact zeros
    (Fp is a sublane multiple so in-kernel slices stay tile aligned)."""
    f = n // 2 + 1
    k = np.arange(fp, dtype=np.float64)[:, None]          # (Fp, 1)
    t = np.arange(n, dtype=np.float64)[None, :]           # (1, n)
    ang = 2.0 * np.pi * k * t / n                         # (Fp, n)
    scale = 1.0 / np.sqrt(n)

    cos = np.cos(ang) * scale
    msin = -np.sin(ang) * scale
    cos[f:, :] = 0.0
    msin[f:, :] = 0.0
    fwd = np.concatenate([cos, msin], axis=0).astype(np.float32)     # (2Fp, n)

    # Hermitian-expansion weights for irfft (DC / Nyquist counted once).
    w = np.full((fp, 1), 2.0)
    w[0, 0] = 1.0
    if n % 2 == 0:
        w[f - 1, 0] = 1.0
    w[f:, 0] = 0.0
    inv_cos = (np.cos(ang) * scale * w).T.copy()                      # (n, Fp)
    inv_sin = (-np.sin(ang) * scale * w).T.copy()
    # irfft discards the imaginary part at DC (and Nyquist for even n); zero
    # those columns exactly instead of relying on ~1e-16 sin() residue.
    inv_sin[:, 0] = 0.0
    if n % 2 == 0:
        inv_sin[:, f - 1] = 0.0
    inv_cos[:, f:] = 0.0
    inv_sin[:, f:] = 0.0
    return fwd, inv_cos.astype(np.float32), inv_sin.astype(np.float32)


# ---------------------------------------------------------------------------
# Generation-aware VMEM budget and batch-tile selection
# ---------------------------------------------------------------------------
@functools.lru_cache(maxsize=None)
def _hw_vmem_budget():
    """(vmem_limit_bytes, prefer_multi_step).

    v5e/v6e: 128 MiB VMEM, single TensorCore -> large limit, grid=1 is fine.
    v7x:     64 MiB / core, two TensorCores -> tighter limit, keep >= 2 grid
             steps (preferably an even count) so both cores get work."""
    cap = None
    try:
        info = pltpu.get_tpu_info()
        cap = int(getattr(info, "vmem_capacity_bytes", 0)) or None
    except Exception:
        cap = None
    if cap is None:
        cap = 64 * 1024 * 1024       # conservative fallback, safe everywhere
    vmem_limit = max(32 * 1024 * 1024,
                     min(cap * 3 // 4, cap - 16 * 1024 * 1024))
    prefer_multi_step = cap <= 80 * 1024 * 1024
    return int(vmem_limit), bool(prefer_multi_step)


def _estimate_step_vmem(tb, n, d, fp, mm_bytes, single_buffer):
    rows = tb * n
    d4 = 4 * d
    f32 = 4
    io = 2 * 2 * rows * d * f32                         # x/out blocks, 2x buffered
    wbuf = 1 if single_buffer else 2                    # grid-invariant operands
    weights = wbuf * ((2 * fp * n + 2 * n * fp + d * d4 + d4 * d) * mm_bytes
                      + (2 * fp * d + 4 * d + 2 * d4) * f32)
    inter = rows * d * f32 * 5 + rows * d4 * f32 * 2    # r_sc/h/out + z/gelu(z)
    return int(1.25 * (io + weights + inter)) + (2 << 20)


def _pick_batch_tile(b, n, d, fp, vmem_limit, prefer_multi_step, mm_bytes,
                     single_buffer):
    """Largest batch tile whose per-step footprint fits the VMEM budget.

    TODO(synk): prime batch sizes degrade to tb=1; a pad-and-mask path would
    keep MXU M large for those."""
    budget = int(0.8 * vmem_limit)
    best = 1
    for tb in range(1, b + 1):
        if b % tb:
            continue
        if tb * n > 4096:                      # diminishing MXU-M returns
            break
        if prefer_multi_step and b >= 2 and b // tb < 2:
            continue
        if _estimate_step_vmem(tb, n, d, fp, mm_bytes, single_buffer) <= budget:
            best = tb
    return best


def _const_spec(shape, single_buffer):
    index_map = lambda i: (0,) * len(shape)
    if single_buffer:
        # Grid-invariant blocks are never re-fetched; single-buffering halves
        # their VMEM cost (matters most for W1/W2 under v7x's 64 MiB VMEM).
        return pl.BlockSpec(shape, index_map, pipeline_mode=pl.Buffered(1))
    return pl.BlockSpec(shape, index_map)


# ---------------------------------------------------------------------------
# Wrapper
# ---------------------------------------------------------------------------
@functools.partial(jax.jit,
                   static_argnames=("vmem_limit", "prefer_multi_step",
                                    "single_buffer"))
def _forward_impl(x, params, *, vmem_limit, prefer_multi_step, single_buffer):
    b, n, d = x.shape
    f = n // 2 + 1
    fp = _round_up(f, 8)
    d4 = 4 * d
    rows_total = b * n

    mm_dtype = jnp.bfloat16 if USE_BF16_MATMUL else jnp.float32
    mm_bytes = 2 if USE_BF16_MATMUL else 4

    fwd_np, invc_np, invs_np = _dft_matrices(n, fp)
    # Matmul operands cast once here (wrapper-side), never per grid step.
    fwd = jnp.asarray(fwd_np, dtype=mm_dtype)
    invc = jnp.asarray(invc_np, dtype=mm_dtype)
    invs = jnp.asarray(invs_np, dtype=mm_dtype)
    w1 = params["w1"].astype(mm_dtype)
    w2 = params["w2"].astype(mm_dtype)

    # Zero-pad the complex filter rows to Fp (elementwise operand, stays f32).
    kre = jnp.pad(params["k_re"].astype(jnp.float32), ((0, fp - f), (0, 0)))
    kim = jnp.pad(params["k_im"].astype(jnp.float32), ((0, fp - f), (0, 0)))

    tb = _pick_batch_tile(b, n, d, fp, vmem_limit, prefer_multi_step,
                          mm_bytes, single_buffer)
    rows = tb * n
    grid = (b // tb,)

    x2 = x.reshape(rows_total, d)     # free layout change outside the kernel
    cs = functools.partial(_const_spec, single_buffer=single_buffer)

    out2 = pl.pallas_call(
        basic_layer_kernel,
        out_shape=jax.ShapeDtypeStruct((rows_total, d), x.dtype),
        grid_spec=pltpu.PrefetchScalarGridSpec(
            num_scalar_prefetch=0,
            grid=grid,
            in_specs=[
                pl.BlockSpec((rows, d), lambda i: (i, 0)),   # x slab
                cs((2 * fp, n)),                              # fwd DFT
                cs((n, fp)), cs((n, fp)),                     # inv DFT cos / -sin
                cs((fp, d)), cs((fp, d)),                     # kre, kim
                cs((1, d)), cs((1, d)),                       # ln1 w, b
                cs((d, d4)), cs((1, d4)),                     # W1, b1
                cs((d4, d)), cs((1, d)),                      # W2, b2
                cs((1, d)), cs((1, d)),                       # ln2 w, b
            ],
            out_specs=pl.BlockSpec((rows, d), lambda i: (i, 0)),
            scratch_shapes=[pltpu.VMEM((rows, d), jnp.float32)],
        ),
        compiler_params=pltpu.CompilerParams(
            dimension_semantics=("parallel",),
            vmem_limit_bytes=vmem_limit,
        ),
    )(x2, fwd, invc, invs, kre, kim,
      params["ln1_w"], params["ln1_b"], w1, params["b1"],
      w2, params["b2"], params["ln2_w"], params["ln2_b"])
    return out2.reshape(b, n, d)


_SINGLE_BUFFER_OK = None   # memoized result of the pl.Buffered(1) probe


def basic_layer_forward(x, params):
    global _SINGLE_BUFFER_OK
    vmem_limit, prefer_multi_step = _hw_vmem_budget()
    if _SINGLE_BUFFER_OK is None:
        try:
            out = _forward_impl(x, params, vmem_limit=vmem_limit,
                                prefer_multi_step=prefer_multi_step,
                                single_buffer=True)
            _SINGLE_BUFFER_OK = True
            return out
        except Exception:
            # pipeline_mode=pl.Buffered(1) unsupported in this jax build ->
            # fall back to default double-buffered constant blocks.
            _SINGLE_BUFFER_OK = False
    return _forward_impl(x, params, vmem_limit=vmem_limit,
                         prefer_multi_step=prefer_multi_step,
                         single_buffer=_SINGLE_BUFFER_OK)


# ---------------------------------------------------------------------------
# Pure-JAX reference (uses jnp.fft) for a correctness cross-check
# ---------------------------------------------------------------------------
def reference_forward(x, params):
    b, n, d = x.shape
    y = jnp.fft.rfft(x, axis=1, norm="ortho")
    kernel = params["k_re"] + 1j * params["k_im"]
    y = y * kernel[None, :, :]
    y = jnp.fft.irfft(y, n=n, axis=1, norm="ortho")

    def ln(v, w, bb):
        u = v.mean(-1, keepdims=True)
        s = ((v - u) ** 2).mean(-1, keepdims=True)
        return w * ((v - u) / jnp.sqrt(s + 1e-12)) + bb

    h = ln(y + x, params["ln1_w"][0], params["ln1_b"][0])
    z = h @ params["w1"] + params["b1"][0]
    z = z * 0.5 * (1.0 + lax.erf(z / math.sqrt(2.0)))
    z2 = z @ params["w2"] + params["b2"][0]
    return ln(z2 + h, params["ln2_w"][0], params["ln2_b"][0])


# ---------------------------------------------------------------------------
# Main
# ---------------------------------------------------------------------------
if __name__ == "__main__":
    batch, max_len, d_model = 2, 8, 32
    f = max_len // 2 + 1
    d4 = 4 * d_model

    key = jax.random.PRNGKey(0)
    keys = jax.random.split(key, 8)

    # Deterministic synthetic parameters (shapes follow the module __init__).
    params = {
        # FilterLayer.filter: (1, max_len//2+1, d_model, 2) * 0.02 -> re / im
        "k_re": 0.02 * jax.random.normal(keys[0], (f, d_model), jnp.float32),
        "k_im": 0.02 * jax.random.normal(keys[1], (f, d_model), jnp.float32),
        "ln1_w": jnp.ones((1, d_model), jnp.float32),
        "ln1_b": jnp.zeros((1, d_model), jnp.float32),
        "w1": 0.05 * jax.random.normal(keys[2], (d_model, d4), jnp.float32),
        "b1": 0.05 * jax.random.normal(keys[3], (1, d4), jnp.float32),
        "w2": 0.05 * jax.random.normal(keys[4], (d4, d_model), jnp.float32),
        "b2": 0.05 * jax.random.normal(keys[5], (1, d_model), jnp.float32),
        "ln2_w": jnp.ones((1, d_model), jnp.float32),
        "ln2_b": jnp.zeros((1, d_model), jnp.float32),
    }

    x = jax.random.normal(keys[6], (batch, max_len, d_model), jnp.float32)

    out = basic_layer_forward(x, params)
    out = jax.block_until_ready(out)

    ref = reference_forward(x, params)
    assert out.shape == (batch, max_len, d_model)
    assert jnp.allclose(out, ref, atol=1e-3, rtol=1e-3), (
        float(jnp.max(jnp.abs(out - ref))))

    print("KERNEL_OK")
</pallas_src>

<mosaic_0001>
module attributes {stable_mosaic.version = 11 : i64} {
  func.func @basic_layer_kernel(%arg0: i32, %arg1: memref<8x32xf32, #tpu.memory_space<vmem>>, %arg2: memref<16x8xf32, #tpu.memory_space<vmem>>, %arg3: memref<8x8xf32, #tpu.memory_space<vmem>>, %arg4: memref<8x8xf32, #tpu.memory_space<vmem>>, %arg5: memref<8x32xf32, #tpu.memory_space<vmem>>, %arg6: memref<8x32xf32, #tpu.memory_space<vmem>>, %arg7: memref<1x32xf32, #tpu.memory_space<vmem>>, %arg8: memref<1x32xf32, #tpu.memory_space<vmem>>, %arg9: memref<32x128xf32, #tpu.memory_space<vmem>>, %arg10: memref<1x128xf32, #tpu.memory_space<vmem>>, %arg11: memref<128x32xf32, #tpu.memory_space<vmem>>, %arg12: memref<1x32xf32, #tpu.memory_space<vmem>>, %arg13: memref<1x32xf32, #tpu.memory_space<vmem>>, %arg14: memref<1x32xf32, #tpu.memory_space<vmem>>, %arg15: memref<8x32xf32, #tpu.memory_space<vmem>>, %arg16: memref<8x32xf32, #tpu.memory_space<vmem>>) attributes {dimension_semantics = [#tpu.dimension_semantics<parallel>], iteration_bounds = array<i64: 2>, scalar_prefetch = 0 : i64, scratch_operands = 1 : i64, tpu.core_type = #tpu.core_type<tc>, window_params = [{transform_indices = @transform_0, window_bounds = array<i64: 8, 32>}, {pipeline_mode = #tpu.pipeline_mode<synchronous>, transform_indices = @transform_1, window_bounds = array<i64: 16, 8>}, {pipeline_mode = #tpu.pipeline_mode<synchronous>, transform_indices = @transform_2, window_bounds = array<i64: 8, 8>}, {pipeline_mode = #tpu.pipeline_mode<synchronous>, transform_indices = @transform_3, window_bounds = array<i64: 8, 8>}, {pipeline_mode = #tpu.pipeline_mode<synchronous>, transform_indices = @transform_4, window_bounds = array<i64: 8, 32>}, {pipeline_mode = #tpu.pipeline_mode<synchronous>, transform_indices = @transform_5, window_bounds = array<i64: 8, 32>}, {pipeline_mode = #tpu.pipeline_mode<synchronous>, transform_indices = @transform_6, window_bounds = array<i64: 1, 32>}, {pipeline_mode = #tpu.pipeline_mode<synchronous>, transform_indices = @transform_7, window_bounds = array<i64: 1, 32>}, {pipeline_mode = #tpu.pipeline_mode<synchronous>, transform_indices = @transform_8, window_bounds = array<i64: 32, 128>}, {pipeline_mode = #tpu.pipeline_mode<synchronous>, transform_indices = @transform_9, window_bounds = array<i64: 1, 128>}, {pipeline_mode = #tpu.pipeline_mode<synchronous>, transform_indices = @transform_10, window_bounds = array<i64: 128, 32>}, {pipeline_mode = #tpu.pipeline_mode<synchronous>, transform_indices = @transform_11, window_bounds = array<i64: 1, 32>}, {pipeline_mode = #tpu.pipeline_mode<synchronous>, transform_indices = @transform_12, window_bounds = array<i64: 1, 32>}, {pipeline_mode = #tpu.pipeline_mode<synchronous>, transform_indices = @transform_13, window_bounds = array<i64: 1, 32>}, {transform_indices = @transform_14, window_bounds = array<i64: 8, 32>}]} {
    %c0 = arith.constant 0 : index
    %c0_0 = arith.constant 0 : index
    %0 = vector.load %arg1[%c0, %c0_0] : memref<8x32xf32, #tpu.memory_space<vmem>>, vector<8x32xf32>
    %c0_1 = arith.constant 0 : index
    %c0_2 = arith.constant 0 : index
    %1 = vector.load %arg2[%c0_1, %c0_2] : memref<16x8xf32, #tpu.memory_space<vmem>>, vector<16x8xf32>
    %c0_3 = arith.constant 0 : index
    %c0_4 = arith.constant 0 : index
    %2 = vector.load %arg3[%c0_3, %c0_4] : memref<8x8xf32, #tpu.memory_space<vmem>>, vector<8x8xf32>
    %c0_5 = arith.constant 0 : index
    %c0_6 = arith.constant 0 : index
    %3 = vector.load %arg4[%c0_5, %c0_6] : memref<8x8xf32, #tpu.memory_space<vmem>>, vector<8x8xf32>
    %c0_7 = arith.constant 0 : index
    %c0_8 = arith.constant 0 : index
    %4 = vector.load %arg5[%c0_7, %c0_8] : memref<8x32xf32, #tpu.memory_space<vmem>>, vector<8x32xf32>
    %c0_9 = arith.constant 0 : index
    %c0_10 = arith.constant 0 : index
    %5 = vector.load %arg6[%c0_9, %c0_10] : memref<8x32xf32, #tpu.memory_space<vmem>>, vector<8x32xf32>
    %cst = arith.constant dense<0.000000e+00> : vector<16x32xf32>
    %6 = tpu.matmul %1, %0, %cst {dimension_numbers = #tpu.dot_dimension_numbers<[1], [0], [0], [1], [0, 0, 1, 1], [], []>} : vector<16x8xf32>, vector<8x32xf32>, vector<16x32xf32> -> vector<16x32xf32>
    %7 = vector.extract_strided_slice %6 {offsets = [0, 0], sizes = [8, 32], strides = [1, 1]} : vector<16x32xf32> to vector<8x32xf32>
    %8 = vector.extract_strided_slice %6 {offsets = [8, 0], sizes = [8, 32], strides = [1, 1]} : vector<16x32xf32> to vector<8x32xf32>
    %9 = arith.mulf %7, %4 : vector<8x32xf32>
    %10 = arith.mulf %8, %5 : vector<8x32xf32>
    %11 = arith.subf %9, %10 : vector<8x32xf32>
    %12 = arith.mulf %7, %5 : vector<8x32xf32>
    %13 = arith.mulf %8, %4 : vector<8x32xf32>
    %14 = arith.addf %12, %13 : vector<8x32xf32>
    %cst_11 = arith.constant dense<0.000000e+00> : vector<8x32xf32>
    %15 = tpu.matmul %2, %11, %cst_11 {dimension_numbers = #tpu.dot_dimension_numbers<[1], [0], [0], [1], [0, 0, 1, 1], [], []>} : vector<8x8xf32>, vector<8x32xf32>, vector<8x32xf32> -> vector<8x32xf32>
    %cst_12 = arith.constant dense<0.000000e+00> : vector<8x32xf32>
    %16 = tpu.matmul %3, %14, %cst_12 {dimension_numbers = #tpu.dot_dimension_numbers<[1], [0], [0], [1], [0, 0, 1, 1], [], []>} : vector<8x8xf32>, vector<8x32xf32>, vector<8x32xf32> -> vector<8x32xf32>
    %17 = arith.addf %15, %16 : vector<8x32xf32>
    %18 = arith.addf %17, %0 : vector<8x32xf32>
    %c0_13 = arith.constant 0 : index
    %c0_14 = arith.constant 0 : index
    %19 = vector.load %arg16[%c0_13, %c0_14] : memref<8x32xf32, #tpu.memory_space<vmem>>, vector<8x32xf32>
    tpu.vector_store %arg16[%c0_13, %c0_14], %18 {strides = array<i32>} : memref<8x32xf32, #tpu.memory_space<vmem>>, vector<8x32xf32>,
    %c0_15 = arith.constant 0 : index
    %c0_16 = arith.constant 0 : index
    %20 = vector.load %arg16[%c0_15, %c0_16] : memref<8x32xf32, #tpu.memory_space<vmem>>, vector<8x32xf32>
    %c0_17 = arith.constant 0 : index
    %c0_18 = arith.constant 0 : index
    %21 = vector.load %arg7[%c0_17, %c0_18] : memref<1x32xf32, #tpu.memory_space<vmem>>, vector<1x32xf32>
    %c0_19 = arith.constant 0 : index
    %c0_20 = arith.constant 0 : index
    %22 = vector.load %arg8[%c0_19, %c0_20] : memref<1x32xf32, #tpu.memory_space<vmem>>, vector<1x32xf32>
    %cst_21 = arith.constant dense<0.000000e+00> : vector<8xf32>
    %23 = vector.multi_reduction <add>, %20, %cst_21 [1] : vector<8x32xf32> to vector<8xf32>
    %24 = vector.shape_cast %23 : vector<8xf32> to vector<8x1xf32>
    %cst_22 = arith.constant 3.200000e+01 : f32
    %25 = vector.broadcast %cst_22 : f32 to vector<8x1xf32>
    %26 = arith.divf %24, %25 : vector<8x1xf32>
    %27 = vector.broadcast %26 : vector<8x1xf32> to vector<8x32xf32>
    %28 = arith.subf %20, %27 : vector<8x32xf32>
    %29 = arith.mulf %28, %28 : vector<8x32xf32>
    %cst_23 = arith.constant dense<0.000000e+00> : vector<8xf32>
    %30 = vector.multi_reduction <add>, %29, %cst_23 [1] : vector<8x32xf32> to vector<8xf32>
    %31 = vector.shape_cast %30 : vector<8xf32> to vector<8x1xf32>
    %cst_24 = arith.constant 3.200000e+01 : f32
    %32 = vector.broadcast %cst_24 : f32 to vector<8x1xf32>
    %33 = arith.divf %31, %32 : vector<8x1xf32>
    %cst_25 = arith.constant 9.99999996E-13 : f32
    %34 = vector.broadcast %cst_25 : f32 to vector<8x1xf32>
    %35 = arith.addf %33, %34 : vector<8x1xf32>
    %36 = math.rsqrt %35 : vector<8x1xf32>
    %37 = vector.broadcast %36 : vector<8x1xf32> to vector<8x32xf32>
    %38 = arith.mulf %28, %37 : vector<8x32xf32>
    %39 = vector.broadcast %21 : vector<1x32xf32> to vector<8x32xf32>
    %40 = arith.mulf %39, %38 : vector<8x32xf32>
    %41 = vector.broadcast %22 : vector<1x32xf32> to vector<8x32xf32>
    %42 = arith.addf %40, %41 : vector<8x32xf32>
    %c0_26 = arith.constant 0 : index
    %c0_27 = arith.constant 0 : index
    %43 = vector.load %arg9[%c0_26, %c0_27] : memref<32x128xf32, #tpu.memory_space<vmem>>, vector<32x128xf32>
    %cst_28 = arith.constant dense<0.000000e+00> : vector<8x128xf32>
    %44 = tpu.matmul %42, %43, %cst_28 {dimension_numbers = #tpu.dot_dimension_numbers<[1], [0], [0], [1], [0, 0, 1, 1], [], []>} : vector<8x32xf32>, vector<32x128xf32>, vector<8x128xf32> -> vector<8x128xf32>
    %c0_29 = arith.constant 0 : index
    %c0_30 = arith.constant 0 : index
    %45 = vector.load %arg10[%c0_29, %c0_30] : memref<1x128xf32, #tpu.memory_space<vmem>>, vector<1x128xf32>
    %46 = vector.broadcast %45 : vector<1x128xf32> to vector<8x128xf32>
    %47 = arith.addf %44, %46 : vector<8x128xf32>
    %cst_31 = arith.constant 0.707106769 : f32
    %48 = vector.broadcast %cst_31 : f32 to vector<8x128xf32>
    %49 = arith.mulf %47, %48 : vector<8x128xf32>
    %50 = math.erf %49 : vector<8x128xf32>
    %cst_32 = arith.constant 1.000000e+00 : f32
    %51 = vector.broadcast %cst_32 : f32 to vector<8x128xf32>
    %52 = arith.addf %51, %50 : vector<8x128xf32>
    %cst_33 = arith.constant 5.000000e-01 : f32
    %53 = vector.broadcast %cst_33 : f32 to vector<8x128xf32>
    %54 = arith.mulf %53, %52 : vector<8x128xf32>
    %55 = arith.mulf %47, %54 : vector<8x128xf32>
    %c0_34 = arith.constant 0 : index
    %c0_35 = arith.constant 0 : index
    %56 = vector.load %arg11[%c0_34, %c0_35] : memref<128x32xf32, #tpu.memory_space<vmem>>, vector<128x32xf32>
    %cst_36 = arith.constant dense<0.000000e+00> : vector<8x32xf32>
    %57 = tpu.matmul %55, %56, %cst_36 {dimension_numbers = #tpu.dot_dimension_numbers<[1], [0], [0], [1], [0, 0, 1, 1], [], []>} : vector<8x128xf32>, vector<128x32xf32>, vector<8x32xf32> -> vector<8x32xf32>
    %c0_37 = arith.constant 0 : index
    %c0_38 = arith.constant 0 : index
    %58 = vector.load %arg12[%c0_37, %c0_38] : memref<1x32xf32, #tpu.memory_space<vmem>>, vector<1x32xf32>
    %59 = vector.broadcast %58 : vector<1x32xf32> to vector<8x32xf32>
    %60 = arith.addf %57, %59 : vector<8x32xf32>
    %61 = arith.addf %60, %42 : vector<8x32xf32>
    %c0_39 = arith.constant 0 : index
    %c0_40 = arith.constant 0 : index
    %62 = vector.load %arg13[%c0_39, %c0_40] : memref<1x32xf32, #tpu.memory_space<vmem>>, vector<1x32xf32>
    %c0_41 = arith.constant 0 : index
    %c0_42 = arith.constant 0 : index
    %63 = vector.load %arg14[%c0_41, %c0_42] : memref<1x32xf32, #tpu.memory_space<vmem>>, vector<1x32xf32>
    %cst_43 = arith.constant dense<0.000000e+00> : vector<8xf32>
    %64 = vector.multi_reduction <add>, %61, %cst_43 [1] : vector<8x32xf32> to vector<8xf32>
    %65 = vector.shape_cast %64 : vector<8xf32> to vector<8x1xf32>
    %cst_44 = arith.constant 3.200000e+01 : f32
    %66 = vector.broadcast %cst_44 : f32 to vector<8x1xf32>
    %67 = arith.divf %65, %66 : vector<8x1xf32>
    %68 = vector.broadcast %67 : vector<8x1xf32> to vector<8x32xf32>
    %69 = arith.subf %61, %68 : vector<8x32xf32>
    %70 = arith.mulf %69, %69 : vector<8x32xf32>
    %cst_45 = arith.constant dense<0.000000e+00> : vector<8xf32>
    %71 = vector.multi_reduction <add>, %70, %cst_45 [1] : vector<8x32xf32> to vector<8xf32>
    %72 = vector.shape_cast %71 : vector<8xf32> to vector<8x1xf32>
    %cst_46 = arith.constant 3.200000e+01 : f32
    %73 = vector.broadcast %cst_46 : f32 to vector<8x1xf32>
    %74 = arith.divf %72, %73 : vector<8x1xf32>
    %cst_47 = arith.constant 9.99999996E-13 : f32
    %75 = vector.broadcast %cst_47 : f32 to vector<8x1xf32>
    %76 = arith.addf %74, %75 : vector<8x1xf32>
    %77 = math.rsqrt %76 : vector<8x1xf32>
    %78 = vector.broadcast %77 : vector<8x1xf32> to vector<8x32xf32>
    %79 = arith.mulf %69, %78 : vector<8x32xf32>
    %80 = vector.broadcast %62 : vector<1x32xf32> to vector<8x32xf32>
    %81 = arith.mulf %80, %79 : vector<8x32xf32>
    %82 = vector.broadcast %63 : vector<1x32xf32> to vector<8x32xf32>
    %83 = arith.addf %81, %82 : vector<8x32xf32>
    %c0_48 = arith.constant 0 : index
    %c0_49 = arith.constant 0 : index
    %84 = vector.load %arg15[%c0_48, %c0_49] : memref<8x32xf32, #tpu.memory_space<vmem>>, vector<8x32xf32>
    tpu.vector_store %arg15[%c0_48, %c0_49], %83 {strides = array<i32>} : memref<8x32xf32, #tpu.memory_space<vmem>>, vector<8x32xf32>,
    return
  }
  func.func @transform_0(%arg0: i32) -> (i32, i32) {
    %c0_i32 = arith.constant 0 : i32
    %c0_i32_0 = arith.constant 0 : i32
    return %arg0, %c0_i32 : i32, i32
  }
  func.func @transform_1(%arg0: i32) -> (i32, i32) {
    %c0_i32 = arith.constant 0 : i32
    %c0_i32_0 = arith.constant 0 : i32
    %c0_i32_1 = arith.constant 0 : i32
    return %c0_i32, %c0_i32_0 : i32, i32
  }
  func.func @transform_2(%arg0: i32) -> (i32, i32) {
    %c0_i32 = arith.constant 0 : i32
    %c0_i32_0 = arith.constant 0 : i32
    %c0_i32_1 = arith.constant 0 : i32
    return %c0_i32, %c0_i32_0 : i32, i32
  }
  func.func @transform_3(%arg0: i32) -> (i32, i32) {
    %c0_i32 = arith.constant 0 : i32
    %c0_i32_0 = arith.constant 0 : i32
    %c0_i32_1 = arith.constant 0 : i32
    return %c0_i32, %c0_i32_0 : i32, i32
  }
  func.func @transform_4(%arg0: i32) -> (i32, i32) {
    %c0_i32 = arith.constant 0 : i32
    %c0_i32_0 = arith.constant 0 : i32
    %c0_i32_1 = arith.constant 0 : i32
    return %c0_i32, %c0_i32_0 : i32, i32
  }
  func.func @transform_5(%arg0: i32) -> (i32, i32) {
    %c0_i32 = arith.constant 0 : i32
    %c0_i32_0 = arith.constant 0 : i32
    %c0_i32_1 = arith.constant 0 : i32
    return %c0_i32, %c0_i32_0 : i32, i32
  }
  func.func @transform_6(%arg0: i32) -> (i32, i32) {
    %c0_i32 = arith.constant 0 : i32
    %c0_i32_0 = arith.constant 0 : i32
    %c0_i32_1 = arith.constant 0 : i32
    return %c0_i32, %c0_i32_0 : i32, i32
  }
  func.func @transform_7(%arg0: i32) -> (i32, i32) {
    %c0_i32 = arith.constant 0 : i32
    %c0_i32_0 = arith.constant 0 : i32
    %c0_i32_1 = arith.constant 0 : i32
    return %c0_i32, %c0_i32_0 : i32, i32
  }
  func.func @transform_8(%arg0: i32) -> (i32, i32) {
    %c0_i32 = arith.constant 0 : i32
    %c0_i32_0 = arith.constant 0 : i32
    %c0_i32_1 = arith.constant 0 : i32
    return %c0_i32, %c0_i32_0 : i32, i32
  }
  func.func @transform_9(%arg0: i32) -> (i32, i32) {
    %c0_i32 = arith.constant 0 : i32
    %c0_i32_0 = arith.constant 0 : i32
    %c0_i32_1 = arith.constant 0 : i32
    return %c0_i32, %c0_i32_0 : i32, i32
  }
  func.func @transform_10(%arg0: i32) -> (i32, i32) {
    %c0_i32 = arith.constant 0 : i32
    %c0_i32_0 = arith.constant 0 : i32
    %c0_i32_1 = arith.constant 0 : i32
    return %c0_i32, %c0_i32_0 : i32, i32
  }
  func.func @transform_11(%arg0: i32) -> (i32, i32) {
    %c0_i32 = arith.constant 0 : i32
    %c0_i32_0 = arith.constant 0 : i32
    %c0_i32_1 = arith.constant 0 : i32
    return %c0_i32, %c0_i32_0 : i32, i32
  }
  func.func @transform_12(%arg0: i32) -> (i32, i32) {
    %c0_i32 = arith.constant 0 : i32
    %c0_i32_0 = arith.constant 0 : i32
    %c0_i32_1 = arith.constant 0 : i32
    return %c0_i32, %c0_i32_0 : i32, i32
  }
  func.func @transform_13(%arg0: i32) -> (i32, i32) {
    %c0_i32 = arith.constant 0 : i32
    %c0_i32_0 = arith.constant 0 : i32
    %c0_i32_1 = arith.constant 0 : i32
    return %c0_i32, %c0_i32_0 : i32, i32
  }
  func.func @transform_14(%arg0: i32) -> (i32, i32) {
    %c0_i32 = arith.constant 0 : i32
    %c0_i32_0 = arith.constant 0 : i32
    return %arg0, %c0_i32 : i32, i32
  }
}

module attributes {stable_mosaic.version = 11 : i64} {
  func.func @basic_layer_kernel(%arg0: i32, %arg1: memref<8x32xf32, #tpu.memory_space<vmem>>, %arg2: memref<16x8xf32, #tpu.memory_space<vmem>>, %arg3: memref<8x8xf32, #tpu.memory_space<vmem>>, %arg4: memref<8x8xf32, #tpu.memory_space<vmem>>, %arg5: memref<8x32xf32, #tpu.memory_space<vmem>>, %arg6: memref<8x32xf32, #tpu.memory_space<vmem>>, %arg7: memref<1x32xf32, #tpu.memory_space<vmem>>, %arg8: memref<1x32xf32, #tpu.memory_space<vmem>>, %arg9: memref<32x128xf32, #tpu.memory_space<vmem>>, %arg10: memref<1x128xf32, #tpu.memory_space<vmem>>, %arg11: memref<128x32xf32, #tpu.memory_space<vmem>>, %arg12: memref<1x32xf32, #tpu.memory_space<vmem>>, %arg13: memref<1x32xf32, #tpu.memory_space<vmem>>, %arg14: memref<1x32xf32, #tpu.memory_space<vmem>>, %arg15: memref<8x32xf32, #tpu.memory_space<vmem>>, %arg16: memref<8x32xf32, #tpu.memory_space<vmem>>) attributes {dimension_semantics = [#tpu.dimension_semantics<parallel>], iteration_bounds = array<i64: 2>, scalar_prefetch = 0 : i64, scratch_operands = 1 : i64, tpu.core_type = #tpu.core_type<tc>, window_params = [{transform_indices = @transform_0, window_bounds = array<i64: 8, 32>}, {pipeline_mode = #tpu.pipeline_mode<synchronous>, transform_indices = @transform_1, window_bounds = array<i64: 16, 8>}, {pipeline_mode = #tpu.pipeline_mode<synchronous>, transform_indices = @transform_2, window_bounds = array<i64: 8, 8>}, {pipeline_mode = #tpu.pipeline_mode<synchronous>, transform_indices = @transform_3, window_bounds = array<i64: 8, 8>}, {pipeline_mode = #tpu.pipeline_mode<synchronous>, transform_indices = @transform_4, window_bounds = array<i64: 8, 32>}, {pipeline_mode = #tpu.pipeline_mode<synchronous>, transform_indices = @transform_5, window_bounds = array<i64: 8, 32>}, {pipeline_mode = #tpu.pipeline_mode<synchronous>, transform_indices = @transform_6, window_bounds = array<i64: 1, 32>}, {pipeline_mode = #tpu.pipeline_mode<synchronous>, transform_indices = @transform_7, window_bounds = array<i64: 1, 32>}, {pipeline_mode = #tpu.pipeline_mode<synchronous>, transform_indices = @transform_8, window_bounds = array<i64: 32, 128>}, {pipeline_mode = #tpu.pipeline_mode<synchronous>, transform_indices = @transform_9, window_bounds = array<i64: 1, 128>}, {pipeline_mode = #tpu.pipeline_mode<synchronous>, transform_indices = @transform_10, window_bounds = array<i64: 128, 32>}, {pipeline_mode = #tpu.pipeline_mode<synchronous>, transform_indices = @transform_11, window_bounds = array<i64: 1, 32>}, {pipeline_mode = #tpu.pipeline_mode<synchronous>, transform_indices = @transform_12, window_bounds = array<i64: 1, 32>}, {pipeline_mode = #tpu.pipeline_mode<synchronous>, transform_indices = @transform_13, window_bounds = array<i64: 1, 32>}, {transform_indices = @transform_14, window_bounds = array<i64: 8, 32>}]} {
    %c0 = arith.constant 0 : index
    %c0_0 = arith.constant 0 : index
    %0 = vector.load %arg1[%c0, %c0_0] : memref<8x32xf32, #tpu.memory_space<vmem>>, vector<8x32xf32>
    %c0_1 = arith.constant 0 : index
    %c0_2 = arith.constant 0 : index
    %1 = vector.load %arg2[%c0_1, %c0_2] : memref<16x8xf32, #tpu.memory_space<vmem>>, vector<16x8xf32>
    %c0_3 = arith.constant 0 : index
    %c0_4 = arith.constant 0 : index
    %2 = vector.load %arg3[%c0_3, %c0_4] : memref<8x8xf32, #tpu.memory_space<vmem>>, vector<8x8xf32>
    %c0_5 = arith.constant 0 : index
    %c0_6 = arith.constant 0 : index
    %3 = vector.load %arg4[%c0_5, %c0_6] : memref<8x8xf32, #tpu.memory_space<vmem>>, vector<8x8xf32>
    %c0_7 = arith.constant 0 : index
    %c0_8 = arith.constant 0 : index
    %4 = vector.load %arg5[%c0_7, %c0_8] : memref<8x32xf32, #tpu.memory_space<vmem>>, vector<8x32xf32>
    %c0_9 = arith.constant 0 : index
    %c0_10 = arith.constant 0 : index
    %5 = vector.load %arg6[%c0_9, %c0_10] : memref<8x32xf32, #tpu.memory_space<vmem>>, vector<8x32xf32>
    %cst = arith.constant dense<0.000000e+00> : vector<16x32xf32>
    %6 = tpu.matmul %1, %0, %cst {dimension_numbers = #tpu.dot_dimension_numbers<[1], [0], [0], [1], [0, 0, 1, 1], [], []>} : vector<16x8xf32>, vector<8x32xf32>, vector<16x32xf32> -> vector<16x32xf32>
    %7 = vector.extract_strided_slice %6 {offsets = [0, 0], sizes = [8, 32], strides = [1, 1]} : vector<16x32xf32> to vector<8x32xf32>
    %8 = vector.extract_strided_slice %6 {offsets = [8, 0], sizes = [8, 32], strides = [1, 1]} : vector<16x32xf32> to vector<8x32xf32>
    %9 = arith.mulf %7, %4 : vector<8x32xf32>
    %10 = arith.mulf %8, %5 : vector<8x32xf32>
    %11 = arith.subf %9, %10 : vector<8x32xf32>
    %12 = arith.mulf %7, %5 : vector<8x32xf32>
    %13 = arith.mulf %8, %4 : vector<8x32xf32>
    %14 = arith.addf %12, %13 : vector<8x32xf32>
    %cst_11 = arith.constant dense<0.000000e+00> : vector<8x32xf32>
    %15 = tpu.matmul %2, %11, %cst_11 {dimension_numbers = #tpu.dot_dimension_numbers<[1], [0], [0], [1], [0, 0, 1, 1], [], []>} : vector<8x8xf32>, vector<8x32xf32>, vector<8x32xf32> -> vector<8x32xf32>
    %cst_12 = arith.constant dense<0.000000e+00> : vector<8x32xf32>
    %16 = tpu.matmul %3, %14, %cst_12 {dimension_numbers = #tpu.dot_dimension_numbers<[1], [0], [0], [1], [0, 0, 1, 1], [], []>} : vector<8x8xf32>, vector<8x32xf32>, vector<8x32xf32> -> vector<8x32xf32>
    %17 = arith.addf %15, %16 : vector<8x32xf32>
    %18 = arith.addf %17, %0 : vector<8x32xf32>
    %c0_13 = arith.constant 0 : index
    %c0_14 = arith.constant 0 : index
    %19 = vector.load %arg16[%c0_13, %c0_14] : memref<8x32xf32, #tpu.memory_space<vmem>>, vector<8x32xf32>
    tpu.vector_store %arg16[%c0_13, %c0_14], %18 {strides = array<i32>} : memref<8x32xf32, #tpu.memory_space<vmem>>, vector<8x32xf32>,
    %c0_15 = arith.constant 0 : index
    %c0_16 = arith.constant 0 : index
    %20 = vector.load %arg16[%c0_15, %c0_16] : memref<8x32xf32, #tpu.memory_space<vmem>>, vector<8x32xf32>
    %c0_17 = arith.constant 0 : index
    %c0_18 = arith.constant 0 : index
    %21 = vector.load %arg7[%c0_17, %c0_18] : memref<1x32xf32, #tpu.memory_space<vmem>>, vector<1x32xf32>
    %c0_19 = arith.constant 0 : index
    %c0_20 = arith.constant 0 : index
    %22 = vector.load %arg8[%c0_19, %c0_20] : memref<1x32xf32, #tpu.memory_space<vmem>>, vector<1x32xf32>
    %cst_21 = arith.constant dense<0.000000e+00> : vector<8xf32>
    %23 = vector.multi_reduction <add>, %20, %cst_21 [1] : vector<8x32xf32> to vector<8xf32>
    %24 = vector.shape_cast %23 : vector<8xf32> to vector<8x1xf32>
    %cst_22 = arith.constant 3.200000e+01 : f32
    %25 = vector.broadcast %cst_22 : f32 to vector<8x1xf32>
    %26 = arith.divf %24, %25 : vector<8x1xf32>
    %27 = vector.broadcast %26 : vector<8x1xf32> to vector<8x32xf32>
    %28 = arith.subf %20, %27 : vector<8x32xf32>
    %29 = arith.mulf %28, %28 : vector<8x32xf32>
    %cst_23 = arith.constant dense<0.000000e+00> : vector<8xf32>
    %30 = vector.multi_reduction <add>, %29, %cst_23 [1] : vector<8x32xf32> to vector<8xf32>
    %31 = vector.shape_cast %30 : vector<8xf32> to vector<8x1xf32>
    %cst_24 = arith.constant 3.200000e+01 : f32
    %32 = vector.broadcast %cst_24 : f32 to vector<8x1xf32>
    %33 = arith.divf %31, %32 : vector<8x1xf32>
    %cst_25 = arith.constant 9.99999996E-13 : f32
    %34 = vector.broadcast %cst_25 : f32 to vector<8x1xf32>
    %35 = arith.addf %33, %34 : vector<8x1xf32>
    %36 = math.rsqrt %35 : vector<8x1xf32>
    %37 = vector.broadcast %36 : vector<8x1xf32> to vector<8x32xf32>
    %38 = arith.mulf %28, %37 : vector<8x32xf32>
    %39 = vector.broadcast %21 : vector<1x32xf32> to vector<8x32xf32>
    %40 = arith.mulf %39, %38 : vector<8x32xf32>
    %41 = vector.broadcast %22 : vector<1x32xf32> to vector<8x32xf32>
    %42 = arith.addf %40, %41 : vector<8x32xf32>
    %c0_26 = arith.constant 0 : index
    %c0_27 = arith.constant 0 : index
    %43 = vector.load %arg9[%c0_26, %c0_27] : memref<32x128xf32, #tpu.memory_space<vmem>>, vector<32x128xf32>
    %cst_28 = arith.constant dense<0.000000e+00> : vector<8x128xf32>
    %44 = tpu.matmul %42, %43, %cst_28 {dimension_numbers = #tpu.dot_dimension_numbers<[1], [0], [0], [1], [0, 0, 1, 1], [], []>} : vector<8x32xf32>, vector<32x128xf32>, vector<8x128xf32> -> vector<8x128xf32>
    %c0_29 = arith.constant 0 : index
    %c0_30 = arith.constant 0 : index
    %45 = vector.load %arg10[%c0_29, %c0_30] : memref<1x128xf32, #tpu.memory_space<vmem>>, vector<1x128xf32>
    %46 = vector.broadcast %45 : vector<1x128xf32> to vector<8x128xf32>
    %47 = arith.addf %44, %46 : vector<8x128xf32>
    %cst_31 = arith.constant 0.707106769 : f32
    %48 = vector.broadcast %cst_31 : f32 to vector<8x128xf32>
    %49 = arith.mulf %47, %48 : vector<8x128xf32>
    %50 = math.erf %49 : vector<8x128xf32>
    %cst_32 = arith.constant 1.000000e+00 : f32
    %51 = vector.broadcast %cst_32 : f32 to vector<8x128xf32>
    %52 = arith.addf %51, %50 : vector<8x128xf32>
    %cst_33 = arith.constant 5.000000e-01 : f32
    %53 = vector.broadcast %cst_33 : f32 to vector<8x128xf32>
    %54 = arith.mulf %53, %52 : vector<8x128xf32>
    %55 = arith.mulf %47, %54 : vector<8x128xf32>
    %c0_34 = arith.constant 0 : index
    %c0_35 = arith.constant 0 : index
    %56 = vector.load %arg11[%c0_34, %c0_35] : memref<128x32xf32, #tpu.memory_space<vmem>>, vector<128x32xf32>
    %cst_36 = arith.constant dense<0.000000e+00> : vector<8x32xf32>
    %57 = tpu.matmul %55, %56, %cst_36 {dimension_numbers = #tpu.dot_dimension_numbers<[1], [0], [0], [1], [0, 0, 1, 1], [], []>} : vector<8x128xf32>, vector<128x32xf32>, vector<8x32xf32> -> vector<8x32xf32>
    %c0_37 = arith.constant 0 : index
    %c0_38 = arith.constant 0 : index
    %58 = vector.load %arg12[%c0_37, %c0_38] : memref<1x32xf32, #tpu.memory_space<vmem>>, vector<1x32xf32>
    %59 = vector.broadcast %58 : vector<1x32xf32> to vector<8x32xf32>
    %60 = arith.addf %57, %59 : vector<8x32xf32>
    %61 = arith.addf %60, %42 : vector<8x32xf32>
    %c0_39 = arith.constant 0 : index
    %c0_40 = arith.constant 0 : index
    %62 = vector.load %arg13[%c0_39, %c0_40] : memref<1x32xf32, #tpu.memory_space<vmem>>, vector<1x32xf32>
    %c0_41 = arith.constant 0 : index
    %c0_42 = arith.constant 0 : index
    %63 = vector.load %arg14[%c0_41, %c0_42] : memref<1x32xf32, #tpu.memory_space<vmem>>, vector<1x32xf32>
    %cst_43 = arith.constant dense<0.000000e+00> : vector<8xf32>
    %64 = vector.multi_reduction <add>, %61, %cst_43 [1] : vector<8x32xf32> to vector<8xf32>
    %65 = vector.shape_cast %64 : vector<8xf32> to vector<8x1xf32>
    %cst_44 = arith.constant 3.200000e+01 : f32
    %66 = vector.broadcast %cst_44 : f32 to vector<8x1xf32>
    %67 = arith.divf %65, %66 : vector<8x1xf32>
    %68 = vector.broadcast %67 : vector<8x1xf32> to vector<8x32xf32>
    %69 = arith.subf %61, %68 : vector<8x32xf32>
    %70 = arith.mulf %69, %69 : vector<8x32xf32>
    %cst_45 = arith.constant dense<0.000000e+00> : vector<8xf32>
    %71 = vector.multi_reduction <add>, %70, %cst_45 [1] : vector<8x32xf32> to vector<8xf32>
    %72 = vector.shape_cast %71 : vector<8xf32> to vector<8x1xf32>
    %cst_46 = arith.constant 3.200000e+01 : f32
    %73 = vector.broadcast %cst_46 : f32 to vector<8x1xf32>
    %74 = arith.divf %72, %73 : vector<8x1xf32>
    %cst_47 = arith.constant 9.99999996E-13 : f32
    %75 = vector.broadcast %cst_47 : f32 to vector<8x1xf32>
    %76 = arith.addf %74, %75 : vector<8x1xf32>
    %77 = math.rsqrt %76 : vector<8x1xf32>
    %78 = vector.broadcast %77 : vector<8x1xf32> to vector<8x32xf32>
    %79 = arith.mulf %69, %78 : vector<8x32xf32>
    %80 = vector.broadcast %62 : vector<1x32xf32> to vector<8x32xf32>
    %81 = arith.mulf %80, %79 : vector<8x32xf32>
    %82 = vector.broadcast %63 : vector<1x32xf32> to vector<8x32xf32>
    %83 = arith.addf %81, %82 : vector<8x32xf32>
    %c0_48 = arith.constant 0 : index
    %c0_49 = arith.constant 0 : index
    %84 = vector.load %arg15[%c0_48, %c0_49] : memref<8x32xf32, #tpu.memory_space<vmem>>, vector<8x32xf32>
    tpu.vector_store %arg15[%c0_48, %c0_49], %83 {strides = array<i32>} : memref<8x32xf32, #tpu.memory_space<vmem>>, vector<8x32xf32>,
    return
  }
  func.func @transform_0(%arg0: i32) -> (i32, i32) {
    %c0_i32 = arith.constant 0 : i32
    %c0_i32_0 = arith.constant 0 : i32
    return %arg0, %c0_i32 : i32, i32
  }
  func.func @transform_1(%arg0: i32) -> (i32, i32) {
    %c0_i32 = arith.constant 0 : i32
    %c0_i32_0 = arith.constant 0 : i32
    %c0_i32_1 = arith.constant 0 : i32
    return %c0_i32, %c0_i32_0 : i32, i32
  }
  func.func @transform_2(%arg0: i32) -> (i32, i32) {
    %c0_i32 = arith.constant 0 : i32
    %c0_i32_0 = arith.constant 0 : i32
    %c0_i32_1 = arith.constant 0 : i32
    return %c0_i32, %c0_i32_0 : i32, i32
  }
  func.func @transform_3(%arg0: i32) -> (i32, i32) {
    %c0_i32 = arith.constant 0 : i32
    %c0_i32_0 = arith.constant 0 : i32
    %c0_i32_1 = arith.constant 0 : i32
    return %c0_i32, %c0_i32_0 : i32, i32
  }
  func.func @transform_4(%arg0: i32) -> (i32, i32) {
    %c0_i32 = arith.constant 0 : i32
    %c0_i32_0 = arith.constant 0 : i32
    %c0_i32_1 = arith.constant 0 : i32
    return %c0_i32, %c0_i32_0 : i32, i32
  }
  func.func @transform_5(%arg0: i32) -> (i32, i32) {
    %c0_i32 = arith.constant 0 : i32
    %c0_i32_0 = arith.constant 0 : i32
    %c0_i32_1 = arith.constant 0 : i32
    return %c0_i32, %c0_i32_0 : i32, i32
  }
  func.func @transform_6(%arg0: i32) -> (i32, i32) {
    %c0_i32 = arith.constant 0 : i32
    %c0_i32_0 = arith.constant 0 : i32
    %c0_i32_1 = arith.constant 0 : i32
    return %c0_i32, %c0_i32_0 : i32, i32
  }
  func.func @transform_7(%arg0: i32) -> (i32, i32) {
    %c0_i32 = arith.constant 0 : i32
    %c0_i32_0 = arith.constant 0 : i32
    %c0_i32_1 = arith.constant 0 : i32
    return %c0_i32, %c0_i32_0 : i32, i32
  }
  func.func @transform_8(%arg0: i32) -> (i32, i32) {
    %c0_i32 = arith.constant 0 : i32
    %c0_i32_0 = arith.constant 0 : i32
    %c0_i32_1 = arith.constant 0 : i32
    return %c0_i32, %c0_i32_0 : i32, i32
  }
  func.func @transform_9(%arg0: i32) -> (i32, i32) {
    %c0_i32 = arith.constant 0 : i32
    %c0_i32_0 = arith.constant 0 : i32
    %c0_i32_1 = arith.constant 0 : i32
    return %c0_i32, %c0_i32_0 : i32, i32
  }
  func.func @transform_10(%arg0: i32) -> (i32, i32) {
    %c0_i32 = arith.constant 0 : i32
    %c0_i32_0 = arith.constant 0 : i32
    %c0_i32_1 = arith.constant 0 : i32
    return %c0_i32, %c0_i32_0 : i32, i32
  }
  func.func @transform_11(%arg0: i32) -> (i32, i32) {
    %c0_i32 = arith.constant 0 : i32
    %c0_i32_0 = arith.constant 0 : i32
    %c0_i32_1 = arith.constant 0 : i32
    return %c0_i32, %c0_i32_0 : i32, i32
  }
  func.func @transform_12(%arg0: i32) -> (i32, i32) {
    %c0_i32 = arith.constant 0 : i32
    %c0_i32_0 = arith.constant 0 : i32
    %c0_i32_1 = arith.constant 0 : i32
    return %c0_i32, %c0_i32_0 : i32, i32
  }
  func.func @transform_13(%arg0: i32) -> (i32, i32) {
    %c0_i32 = arith.constant 0 : i32
    %c0_i32_0 = arith.constant 0 : i32
    %c0_i32_1 = arith.constant 0 : i32
    return %c0_i32, %c0_i32_0 : i32, i32
  }
  func.func @transform_14(%arg0: i32) -> (i32, i32) {
    %c0_i32 = arith.constant 0 : i32
    %c0_i32_0 = arith.constant 0 : i32
    return %arg0, %c0_i32 : i32, i32
  }
}

</mosaic_0001>

<bundles_post_ra>
// kernel: _forward_impl.1
= control target key start
LH: loop header
LB: loop body
LE: loop exit
PB: predicated region body
PF: predicated region fallthrough
CT: control target
= control target key end

     0   :  { %s1235_s0 = inlined_call_operand.vmem [shape: f32[16,32], index: 0, kind: input, shape index: {}]   ;;  %s1236_s1 = inlined_call_operand.vmem [shape: f32[16,8], index: 1, kind: input, shape index: {}]   ;;  %s1237_s2 = inlined_call_operand.vmem [shape: f32[8,8], index: 2, kind: input, shape index: {}]   ;;  %s1238_s3 = inlined_call_operand.vmem [shape: f32[8,8], index: 3, kind: input, shape index: {}]   ;;  %s1239_s4 = inlined_call_operand.vmem [shape: f32[8,32], index: 4, kind: input, shape index: {}]   ;;  %s1240_s5 = inlined_call_operand.vmem [shape: f32[8,32], index: 5, kind: input, shape index: {}]   ;;  %s1241_s6 = inlined_call_operand.vmem [shape: f32[1,32], index: 6, kind: input, shape index: {}]   ;;  %s1242_s7 = inlined_call_operand.vmem [shape: f32[1,32], index: 7, kind: input, shape index: {}]   ;;  %s1243_s8 = inlined_call_operand.vmem [shape: f32[32,128], index: 8, kind: input, shape index: {}]   ;;  %s1244_s9 = inlined_call_operand.vmem [shape: f32[1,128], index: 9, kind: input, shape index: {}]   ;;  %s1245_s10 = inlined_call_operand.vmem [shape: f32[128,32], index: 10, kind: input, shape index: {}]   ;;  %s1246_s11 = inlined_call_operand.vmem [shape: f32[1,32], index: 11, kind: input, shape index: {}]   ;;  %s1247_s12 = inlined_call_operand.vmem [shape: f32[1,32], index: 12, kind: input, shape index: {}]   ;;  %s1248_s13 = inlined_call_operand.vmem [shape: f32[1,32], index: 13, kind: input, shape index: {}]   ;;  %s1249_s14 = inlined_call_operand.hbm [shape: f32[16,32], index: 14, kind: output, shape index: {}]  }
   0x1   :  { %1253 = sst [smem:[#allocation9_spill]] %s1235_s0 }
   0x2   :  { %1254 = sst [smem:[#allocation10_spill]] %s1236_s1 }
   0x3   :  { %19 = vsyncpa [#allocation4], 0 }
   0x4   :  { %21 = vsyncpa [#allocation4 + $0x1], 0  ;;  %s1029_s29 = smov 0   ;;  %s1031_s30 = smov 0  }
   0x5   :  { %s1033_s15 = smov 0   ;;  %s1035_s16 = smov 0  }
   0x6 LB: > { %1255 = sst [smem:[#allocation6_spill]] %s947_s15  ;;  %s1050_s17 = sadd.s32 4294967295, %s951_s16   ;;  %s951_s16 = sphi %s1035_s16, %s1262_s16   ;;  %s947_s15 = sphi %s1033_s15, %s1264_s15   ;;  %s943_s30 = sphi %s1031_s30, %s1266_s30   ;;  %s939_s29 = sphi %s1029_s29, %s1265_s29  }
   0x7   : > { %s819_s18 = sadd.s32 4294967294, %s951_s16   ;;  %s1054_s19 = sadd.s32 1, %s951_s16  }
   0x8   : > { %1256 = sst [smem:[#allocation7_spill]] %s1054_s19  ;;  %s333_s20 = sadd.s32 1, %s947_s15 }
   0x9   : > { %s330_s21 = ssub.s32 %s951_s16, %s1054_s19  ;;  %p343_p0 = scmp.ne.s32.totalorder %s947_s15, %s943_s30 }
   0xa   : > { %p331_p1 = scmp.eq.s32.totalorder %s330_s21, 0  ;;  %p344_p2 = scmp.eq.s32.totalorder %s1050_s17, 1 }
   0xb   : > { %p349_p3 = scmp.ne.s32.totalorder %s943_s30, %s939_s29  ;;  %p350_p4 = scmp.eq.s32.totalorder %s819_s18, 1 }
   0xc   : > { %s1065_s22 = scalar_select %p331_p1, %s947_s15, %s333_s20  }
   0xd   : > { %p1067_p5 = por %p344_p2, %p343_p0  ;;  %p1071_p6 = por %p350_p4, %p349_p3 }
   0xe   : > { %1257 = sst [smem:[#allocation8_spill]] %s1065_s22  ;;  %p822_p7 = scmp.ge.s32.totalorder %s951_s16, 1 }
   0xf   : > { %p414_p8 = scmp.lt.s32.totalorder %s951_s16, 3 }
  0x11   : > { %p415_p9 = pnand %p822_p7, %p414_p8 }
  0x12   : > { %p459_p10 = scmp.lt.s32.totalorder (!%p415_p9), %s1050_s17, 1  ;;  %s1260_s0 = sld [smem:[#allocation9_spill]] (!%p415_p9) }
  0x13   : > { %418 = sbr.rel (%p415_p9) target bundleno = 1169 (0x491), region = 76  ;;  %s1261_s1 = sld [smem:[#allocation10_spill]] (!%p415_p9) }
  0x14   : > { %s456_s28 = sand.u32 (!%p415_p9), 1, %s943_s30   ;;  %s832_s19 = sshll.u32 (!%p415_p9), %s1050_s17, 3 }
  0x15   : > { %s755_s27 = scalar_lea.hbm (!%p415_p9), %s1249_s14, %s832_s19  ;;  %s745_s20 = scalar_lea.sflag (!%p415_p9), [#allocation4], %s456_s28 }
  0x18   : > { %s460_s25 = scalar_select %p459_p10, %s1050_s17, 1  ;;  %vm470_vm0 = vcmask 64512   ;;  %v468_v4 = vld [vmem:[%s1239_s4] sm:$0xff]  ;;  %vm553_vm1 = vcmask 261120   ;;  %v953_v21 = vmov 32.0   ;;  %v598_v33 = vld [vmem:[%s1243_s8 + $0x18] sm:$0xff] }
  0x19   : > { %v464_v0 = vld [vmem:[%s1261_s1] sm:$0xff]  ;;  %v465_v2 = vld [vmem:[%s1261_s1 + $0x8] sm:$0xff]  ;;  %881 = vrcp.f32 %v953_v21  ;;  %618 = vmatpush.msra.mxu3 %v598_v33  ;;  %v597_v34 = vld [vmem:[%s1243_s8 + $0x10] sm:$0xff]  ;;  %s759_s1 = sshll.u32 %s755_s27, 4  ;;  %s760_s1 = int_to_ptr.hbm [resolvable:$true] %s759_s1 }
  0x1a   : > { %s824_s26 = sshll.u32 %s460_s25, 3  ;;  %v469_v5 = vld [vmem:[%s1240_s5] sm:$0xff]  ;;  %v596_v35 = vld [vmem:[%s1243_s8 + $0x8] sm:$0xff]  ;;  %v685_v52 = vld [vmem:[%s1245_s10 + $0x78] sm:$0xff]  ;;  %s903_s21 = sshra.s32 %s760_s1, 4  ;;  %s904_s21 = int_to_ptr.hbm [resolvable:$true] %s903_s21 }
  0x1b   : > { %s462_s18 = scalar_lea.vmem %s1260_s0, %s824_s26  ;;  %v466_v13 = vld [vmem:[%s1237_s2] sm:$0xff]  ;;  %619 = vmatpush.msra.mxu3 %v597_v34  ;;  %690 = vmatpush.msra.mxu0 %v685_v52  ;;  %v684_v53 = vld [vmem:[%s1245_s10 + $0x70] sm:$0xff]  ;;  %v683_v54 = vld [vmem:[%s1245_s10 + $0x68] sm:$0xff]  ;;  %s905_s19 = scalar_lea.hbm %s904_s21, 8 }
  0x1c   : > { %v463_v1 = vld [vmem:[%s462_s18] sm:$0xff]  ;;  %v681_v57 = vld [vmem:[%s1245_s10 + $0x58] sm:$0xff]  ;;  %v680_v59 = vld [vmem:[%s1245_s10 + $0x50] sm:$0xff]  ;;  %s823_s18 = sshll.u32 %s456_s28, 3  ;;  %p906_p11 = scmp.ne.s32.totalorder %s904_s21, %s905_s19 }
  0x1d   : > { %492 = vmatpush.msra.mxu1 %v463_v1  ;;  %v467_v14 = vld [vmem:[%s1238_s3] sm:$0xff]  ;;  %620 = vmatpush.msra.mxu3 %v596_v35  ;;  %v679_v61 = vld [vmem:[%s1245_s10 + $0x48] sm:$0xff]  ;;  %s458_s0 = scalar_lea.vmem [#allocation3], %s823_s18  ;;  %s909_s18 = scalar_lea.hbm %s1249_s14, 16 }
  0x1e   : > { %825 = vmatmul.msk.f32.vlgmr.msra.gmra.mxu1 %vm470_vm0, %v464_v0  ;;  %v595_v36 = vld [vmem:[%s1243_s8] sm:$0xff]  ;;  %691 = vmatpush.msra.mxu0 %v684_v53  ;;  %s757_s17 = sshll.u32 %s458_s0, 4  ;;  %p907_p12 = pnand %p906_p11, %p1067_p5  ;;  %s758_s17 = int_to_ptr.vmem [resolvable:$true] %s757_s17 }
  0x1f   : > { %v882_v22 = vpop.eup %881  ;;  %621 = vmatpush.msra.mxu3 %v595_v36  ;;  %v875_v46 = vld [vmem:[%s1241_s6] ss:$0 sm:$0xff]  ;;  %p910_p0 = scmp.lt.s32.totalorder %s904_s21, %s1249_s14  ;;  %p911_p1 = scmp.lt.s32.totalorder %s909_s18, %s905_s19 }
  0x20   : > { %v562_v23 = vmul.f32 32.0, %v882_v22  ;;  %vm566_vm2 = vweird.f32 %v882_v22  ;;  %v876_v49 = vld [vmem:[%s1242_s7] ss:$0 sm:$0xff]  ;;  %692 = vmatpush.msra.mxu0 %v683_v54  ;;  %p908_p13 = pneg %p907_p12 }
  0x21   : > { %v877_v55 = vld [vmem:[%s1244_s9] ss:$0 sm:$0xff]  ;;  %p912_p2 = por %p911_p1, %p910_p0 }
  0x22   : > { %v563_v24 = vsub.f32 1.0, %v562_v23  ;;  %v682_v56 = vld [vmem:[%s1245_s10 + $0x60] sm:$0xff] }
  0x23   : > { %693 = vmatpush.msra.mxu0 %v682_v56  ;;  %v678_v63 = vld [vmem:[%s1245_s10 + $0x40] sm:$0xff]  ;;  %p913_p3 = pnand %p912_p2, %p908_p13 }
  0x24   : > { %v564_v25 = vmul.f32 %v882_v22, %v563_v24 }
  0x25   : > { %694 = vmatpush.msra.mxu0 %v681_v57 }
  0x26   : > { %826 = vmatmul.msk.f32.gmra.mxu1 %vm470_vm0, %v465_v2  ;;  %v565_v26 = vadd.f32 %v882_v22, %v564_v25 }
  0x27   : > { %695 = vmatpush.msra.mxu0 %v680_v59 }
  0x28   : > { %v1106_v27 = vsel %vm566_vm2, %v882_v22, %v565_v26 }
  0x29   : > { %696 = vmatpush.msra.mxu0 %v679_v61 }
  0x2b   : > { %697 = vmatpush.msra.mxu0 %v678_v63 }
  0x9b   : > { %v494_v3 = vpop.f32.mrf.mxu1 }
  0x9c   : > { %v500_v7 = vmul.f32 %v494_v3, %v468_v4  ;;  %v503_v8 = vmul.f32 %v494_v3, %v469_v5  ;;  %v676_v3 = vld [vmem:[%s1245_s10 + $0x30] sm:$0xff] }
  0xa3   : > { %v497_v6 = vpop.f32.mrf.mxu1 }
  0xa4   : > { %v501_v9 = vmul.f32 %v497_v6, %v469_v5  ;;  %v504_v10 = vmul.f32 %v497_v6, %v468_v4  ;;  %v675_v6 = vld [vmem:[%s1245_s10 + $0x28] sm:$0xff] }
  0xa6   : > { %v505_v11 = vadd.f32 %v504_v10, %v503_v8  ;;  %v502_v12 = vsub.f32 %v500_v7, %v501_v9  ;;  %v674_v9 = vld [vmem:[%s1245_s10 + $0x20] sm:$0xff] }
  0xa8   : > { %524 = vmatpush.msrb.mxu1 %v505_v11  ;;  %547 = vmatpush.msra.mxu2 %v502_v12  ;;  %v673_v12 = vld [vmem:[%s1245_s10 + $0x18] sm:$0xff] }
  0xa9   : > { %828 = vmatmul.msk.f32.vlgmr.msra.gmra.mxu2 %vm470_vm0, %v466_v13  ;;  %827 = vmatmul.msk.f32.vlgmr.msrb.gmra.mxu1 %vm470_vm0, %v467_v14 }
 0x126   : > { %v526_v15 = vpop.f32.mrf.mxu1 }
 0x12c   : > { %v549_v16 = vpop.f32.mrf.mxu2 }
 0x12d   : > { %v550_v17 = vadd.f32 %v549_v16, %v526_v15  ;;  %v672_v15 = vld [vmem:[%s1245_s10 + $0x10] sm:$0xff] }
 0x12f   : > { %v552_v18 = vadd.f32 %v550_v17, %v463_v1  ;;  %v677_v1 = vld [vmem:[%s1245_s10 + $0x38] sm:$0xff]  ;;  %v671_v17 = vld [vmem:[%s1245_s10 + $0x8] sm:$0xff] }
 0x130   : > { %698 = vmatpush.msra.mxu0 %v677_v1 }
 0x131   : > { %554 = vst.msk [vmem:[#allocation2] sm:$0xff] %vm553_vm1, %v552_v18 }
 0x132   : > { %699 = vmatpush.msra.mxu0 %v676_v3 }
 0x134   : > { %700 = vmatpush.msra.mxu0 %v675_v6 }
 0x136   : > { %701 = vmatpush.msra.mxu0 %v674_v9 }
 0x138   : > { %v555_v19 = vld [vmem:[#allocation2] sm:$0xff]  ;;  %702 = vmatpush.msra.mxu0 %v673_v12 }
 0x139   : > { %v558_v20 = vsel %vm553_vm1, %v555_v19, 0.0 }
 0x13a   : > { %559 = vadd.xlane.f32.xlu0 %v558_v20  ;;  %703 = vmatpush.msra.mxu0 %v672_v15  ;;  %v670_v20 = vld [vmem:[%s1245_s10] sm:$0xff] }
 0x13c   : > { %704 = vmatpush.msra.mxu0 %v671_v17 }
 0x13e   : > { %705 = vmatpush.msra.mxu0 %v670_v20 }
 0x1ad   : > { %v560_v28 = vpop.xlane.xlu0 %559 }
 0x1ae   : > { %v568_v29 = vmul.f32 %v1106_v27, %v560_v28 }
 0x1b0   : > { %v569_v30 = vsub.f32 %v555_v19, %v568_v29 }
 0x1b2   : > { %v570_v31 = vmul.f32 %v569_v30, %v569_v30 }
 0x1b4   : > { %v571_v32 = vsel %vm553_vm1, %v570_v31, 0.0 }
 0x1b5   : > { %572 = vadd.xlane.f32.xlu0 %v571_v32 }
 0x228   : > { %v573_v37 = vpop.xlane.xlu0 %572 }
 0x229   : > { %v574_v38 = vmul.f32 %v573_v37, %v1106_v27 }
 0x22b   : > { %v575_v39 = vadd.f32 1e-12, %v574_v38 }
 0x22d   : > { %883 = vrsqrt.f32 %v575_v39  ;;  %vm582_vm4 = vweird.f32 %v575_v39 }
 0x233   : > { %v884_v40 = vpop.eup %883 }
 0x234   : > { %v577_v41 = vmul.f32 %v884_v40, %v575_v39  ;;  %vm583_vm3 = vweird.f32 %v884_v40 }
 0x235   : > { %vm584_vm5 = vmor %vm582_vm4, %vm583_vm3 }
 0x236   : > { %v578_v42 = vmul.f32 %v884_v40, %v577_v41 }
 0x238   : > { %v579_v43 = vmul.f32 0.5, %v578_v42 }
 0x23a   : > { %v580_v44 = vsub.f32 1.5, %v579_v43 }
 0x23c   : > { %v581_v45 = vmul.f32 %v884_v40, %v580_v44 }
 0x23e   : > { %v585_v47 = vsel %vm584_vm5, %v884_v40, %v581_v45 }
 0x23f   : > { %v586_v48 = vmul.f32 %v585_v47, %v569_v30  ;;  %v878_v47 = vld [vmem:[%s1246_s11] ss:$0 sm:$0xff] }
 0x241   : > { %v590_v50 = vmul.f32 %v875_v46, %v586_v48 }
 0x243   : > { %v1129_v51 = vadd.f32 %v876_v49, %v590_v50 }
 0x245   : > { %829 = vmatmul.msk.f32.vlgmr.msra.gmra.mxu3 %vm553_vm1, %v1129_v51 }
 0x2c8   : > { %v623_v58 = vpop.f32.mrf.mxu3 }
 0x2c9   : > { %v1154_v60 = vadd.f32 %v877_v55, %v623_v58 }
 0x2cb   : > { %v626_v62 = vmul.f32 0.70710677, %v1154_v60 }
 0x2cd   : > { %v627_v0 = vmul.f32 %v626_v62, %v626_v62 }
 0x2cf   : > { %v628_v2 = vmin.f32 %v627_v0, 16.0 }
 0x2d1   : > { %v629_v4 = vmul.f32 2.1237322e-06, %v628_v2  ;;  %v640_v5 = vmul.f32 3.8918573e-05, %v628_v2 }
 0x2d3   : > { %v630_v7 = vadd.f32 0.00028619796, %v629_v4  ;;  %v641_v8 = vadd.f32 0.001143296, %v640_v5  ;;  %v880_v4 = vld [vmem:[%s1248_s13] ss:$0 sm:$0xff] }
 0x2d5   : > { %v631_v10 = vmul.f32 %v630_v7, %v628_v2  ;;  %v642_v11 = vmul.f32 %v641_v8, %v628_v2 }
 0x2d7   : > { %v643_v13 = vadd.f32 0.014752088, %v642_v11  ;;  %v632_v14 = vadd.f32 0.0036580483, %v631_v10 }
 0x2d9   : > { %v644_v16 = vmul.f32 %v643_v13, %v628_v2  ;;  %v633_v19 = vmul.f32 %v632_v14, %v628_v2 }
 0x2db   : > { %v645_v18 = vadd.f32 0.112945676, %v644_v16  ;;  %v634_v23 = vadd.f32 0.05243302, %v633_v19 }
 0x2dd   : > { %v646_v21 = vmul.f32 %v645_v18, %v628_v2  ;;  %v635_v26 = vmul.f32 %v634_v23, %v628_v2 }
 0x2df   : > { %v647_v22 = vadd.f32 0.4994258, %v646_v21  ;;  %v636_v28 = vadd.f32 0.18741608, %v635_v26 }
 0x2e1   : > { %v648_v24 = vmul.f32 %v647_v22, %v628_v2  ;;  %v637_v30 = vmul.f32 %v636_v28, %v628_v2  ;;  %v879_v2 = vld [vmem:[%s1247_s12] ss:$0 sm:$0xff] }
 0x2e3   : > { %v649_v25 = vadd.f32 1.0, %v648_v24  ;;  %v638_v34 = vadd.f32 1.1283791, %v637_v30 }
 0x2e5   : > { %885 = vrcp.f32 %v649_v25  ;;  %v661_v33 = vand.u32 2147483648, %v649_v25  ;;  %v659_v36 = vand.u32 2147483647, %v649_v25  ;;  %vm655_vm7 = vweird.f32 %v649_v25 }
 0x2e6   : > { %v639_v39 = vmul.f32 %v638_v34, %v626_v62 }
 0x2e7   : > { %v662_v38 = vor.u32 1.1754944e-38, %v661_v33  ;;  %vm660_vm9 = vcmp.eq.f32.partialorder %v659_v36, 8.507059e+37 }
 0x2eb   : > { %v886_v29 = vpop.eup %885 }
 0x2ec   : > { %v651_v31 = vmul.f32 %v886_v29, %v649_v25  ;;  %vm656_vm6 = vweird.f32 %v886_v29 }
 0x2ed   : > { %vm657_vm8 = vmor %vm655_vm7, %vm656_vm6 }
 0x2ee   : > { %v652_v32 = vsub.f32 1.0, %v651_v31 }
 0x2f0   : > { %v653_v35 = vmul.f32 %v886_v29, %v652_v32 }
 0x2f2   : > { %v654_v37 = vadd.f32 %v886_v29, %v653_v35 }
 0x2f4   : > { %v658_v40 = vsel %vm657_vm8, %v886_v29, %v654_v37 }
 0x2f5   : > { %v663_v41 = vsel %vm660_vm9, %v662_v38, %v658_v40 }
 0x2f6   : > { %v664_v42 = vmul.f32 %v663_v41, %v639_v39 }
 0x2f8   : > { %v830_v43 = vclamps-f32 %v664_v42, 1.0 }
 0x2fa   : > { %v667_v44 = vadd.f32 1.0, %v830_v43 }
 0x2fc   : > { %v668_v45 = vmul.f32 0.5, %v667_v44 }
 0x2fe   : > { %v669_v46 = vmul.f32 %v668_v45, %v1154_v60 }
 0x300   : > { %706 = vmatmul.f32.vlgmr.msra.gmra.mxu0 %v669_v46 }
 0x37d   : > { %v707_v48 = vpop.f32.mrf.mxu0 }
 0x37e   : > { %v708_v49 = vadd.f32 %v878_v47, %v707_v48 }
 0x380   : > { %v710_v50 = vadd.f32 %v708_v49, %v1129_v51 }
 0x382   : > { %v713_v52 = vsel %vm553_vm1, %v710_v50, 0.0 }
 0x383   : > { %714 = vadd.xlane.f32.xlu1 %v713_v52 }
 0x3f6   : > { %v715_v53 = vpop.xlane.xlu1 %714 }
 0x3f7   : > { %v716_v54 = vmul.f32 %v715_v53, %v1106_v27 }
 0x3f9   : > { %v717_v55 = vsub.f32 %v710_v50, %v716_v54 }
 0x3fb   : > { %v718_v56 = vmul.f32 %v717_v55, %v717_v55 }
 0x3fd   : > { %v719_v57 = vsel %vm553_vm1, %v718_v56, 0.0 }
 0x3fe   : > { %720 = vadd.xlane.f32.xlu1 %v719_v57 }
 0x471   : > { %v721_v58 = vpop.xlane.xlu1 %720 }
 0x472   : > { %v722_v59 = vmul.f32 %v721_v58, %v1106_v27 }
 0x474   : > { %v723_v60 = vadd.f32 1e-12, %v722_v59 }
 0x476   : > { %887 = vrsqrt.f32 %v723_v60  ;;  %vm730_vm11 = vweird.f32 %v723_v60 }
 0x47c   : > { %v888_v61 = vpop.eup %887 }
 0x47d   : > { %v725_v51 = vmul.f32 %v888_v61, %v723_v60  ;;  %vm731_vm10 = vweird.f32 %v888_v61 }
 0x47e   : > { %vm732_vm12 = vmor %vm730_vm11, %vm731_vm10 }
 0x47f   : > { %v726_v62 = vmul.f32 %v888_v61, %v725_v51 }
 0x481   : > { %v727_v63 = vmul.f32 0.5, %v726_v62 }
 0x483   : > { %v728_v0 = vsub.f32 1.5, %v727_v63 }
 0x485   : > { %v729_v1 = vmul.f32 %v888_v61, %v728_v0 }
 0x487   : > { %v733_v27 = vsel %vm732_vm12, %v888_v61, %v729_v1 }
 0x488   : > { %v734_v3 = vmul.f32 %v733_v27, %v717_v55 }
 0x48a   : > { %v738_v5 = vmul.f32 %v879_v2, %v734_v3 }
 0x48c   : > { %v742_v6 = vadd.f32 %v880_v4, %v738_v5 }
 0x48e   : > { %743 = vst.msk [vmem:[%s458_s0] sm:$0xff] %vm553_vm1, %v742_v6 }
 0x48f   : > { %916 = shalt.err (!%p913_p3)
}
 0x490   : > { %835 = dma.vmem_to_hbm [thread:$0]  (%p1067_p5), %s758_s17, 128, %s760_s1, %s745_s20  }
 0x491 PF: > { %p841_p4 = scmp.ge.s32.totalorder %s951_s16, 2  ;;  %s771_s0 = sand.u32 1, %s939_s29  }
 0x492   : > { %s772_s28 = scalar_lea.sflag [#allocation4], %s771_s0 }
 0x493   : > { %p838_p7 = pnand %p841_p4, %p1071_p6 }
 0x495   : > { %p839_p8 = pneg %p838_p7 }
 0x497   : > { %934 = dma.done.wait (%p839_p8), %s772_s28, 128  }
 0x498   : > { %936 = vsyncadd (%p839_p8), %s772_s28, 4294967168  ;;  %s1262_s16 = sld [smem:[#allocation7_spill]]  ;;  %s1265_s29 = smov %s943_s30 }
 0x499   : > { %s1263_s22 = sld [smem:[#allocation6_spill]] }
 0x49a   : > { %s1264_s15 = sld [smem:[#allocation8_spill]] }
 0x49e   : > { %p24_p9 = scmp.ge.s32.totalorder %s1262_s16, 4  }
 0x49f   : > { %s1266_s30 = smov %s1263_s22 }
 0x4a0   :  { %26 = sbr.rel (!%p24_p9) target bundleno = 6 (0x6), region = 111 }
 0x4a5   :  { %778 = vsyncpa [#allocation4], 1 }
 0x4a6   :  { %780 = vsyncpa [#allocation4 + $0x1], 1 }

// kernel: _forward_impl.1
= control target key start
LH: loop header
LB: loop body
LE: loop exit
PB: predicated region body
PF: predicated region fallthrough
CT: control target
= control target key end

     0   :  { %s1235_s0 = inlined_call_operand.vmem [shape: f32[16,32], index: 0, kind: input, shape index: {}]   ;;  %s1236_s1 = inlined_call_operand.vmem [shape: f32[16,8], index: 1, kind: input, shape index: {}]   ;;  %s1237_s2 = inlined_call_operand.vmem [shape: f32[8,8], index: 2, kind: input, shape index: {}]   ;;  %s1238_s3 = inlined_call_operand.vmem [shape: f32[8,8], index: 3, kind: input, shape index: {}]   ;;  %s1239_s4 = inlined_call_operand.vmem [shape: f32[8,32], index: 4, kind: input, shape index: {}]   ;;  %s1240_s5 = inlined_call_operand.vmem [shape: f32[8,32], index: 5, kind: input, shape index: {}]   ;;  %s1241_s6 = inlined_call_operand.vmem [shape: f32[1,32], index: 6, kind: input, shape index: {}]   ;;  %s1242_s7 = inlined_call_operand.vmem [shape: f32[1,32], index: 7, kind: input, shape index: {}]   ;;  %s1243_s8 = inlined_call_operand.vmem [shape: f32[32,128], index: 8, kind: input, shape index: {}]   ;;  %s1244_s9 = inlined_call_operand.vmem [shape: f32[1,128], index: 9, kind: input, shape index: {}]   ;;  %s1245_s10 = inlined_call_operand.vmem [shape: f32[128,32], index: 10, kind: input, shape index: {}]   ;;  %s1246_s11 = inlined_call_operand.vmem [shape: f32[1,32], index: 11, kind: input, shape index: {}]   ;;  %s1247_s12 = inlined_call_operand.vmem [shape: f32[1,32], index: 12, kind: input, shape index: {}]   ;;  %s1248_s13 = inlined_call_operand.vmem [shape: f32[1,32], index: 13, kind: input, shape index: {}]   ;;  %s1249_s14 = inlined_call_operand.hbm [shape: f32[16,32], index: 14, kind: output, shape index: {}]  }
   0x1   :  { %1253 = sst [smem:[#allocation9_spill]] %s1235_s0 }
   0x2   :  { %1254 = sst [smem:[#allocation10_spill]] %s1236_s1 }
   0x3   :  { %19 = vsyncpa [#allocation4], 0 }
   0x4   :  { %21 = vsyncpa [#allocation4 + $0x1], 0  ;;  %s1029_s29 = smov 0   ;;  %s1031_s30 = smov 0  }
   0x5   :  { %s1033_s15 = smov 0   ;;  %s1035_s16 = smov 0  }
   0x6 LB: > { %1255 = sst [smem:[#allocation6_spill]] %s947_s15  ;;  %s1050_s17 = sadd.s32 4294967295, %s951_s16   ;;  %s951_s16 = sphi %s1035_s16, %s1262_s16   ;;  %s947_s15 = sphi %s1033_s15, %s1264_s15   ;;  %s943_s30 = sphi %s1031_s30, %s1266_s30   ;;  %s939_s29 = sphi %s1029_s29, %s1265_s29  }
   0x7   : > { %s819_s18 = sadd.s32 4294967294, %s951_s16   ;;  %s1054_s19 = sadd.s32 1, %s951_s16  }
   0x8   : > { %1256 = sst [smem:[#allocation7_spill]] %s1054_s19  ;;  %s333_s20 = sadd.s32 1, %s947_s15 }
   0x9   : > { %s330_s21 = ssub.s32 %s951_s16, %s1054_s19  ;;  %p343_p0 = scmp.ne.s32.totalorder %s947_s15, %s943_s30 }
   0xa   : > { %p331_p1 = scmp.eq.s32.totalorder %s330_s21, 0  ;;  %p344_p2 = scmp.eq.s32.totalorder %s1050_s17, 1 }
   0xb   : > { %p349_p3 = scmp.ne.s32.totalorder %s943_s30, %s939_s29  ;;  %p350_p4 = scmp.eq.s32.totalorder %s819_s18, 1 }
   0xc   : > { %s1065_s22 = scalar_select %p331_p1, %s947_s15, %s333_s20  }
   0xd   : > { %p1067_p5 = por %p344_p2, %p343_p0  ;;  %p1071_p6 = por %p350_p4, %p349_p3 }
   0xe   : > { %1257 = sst [smem:[#allocation8_spill]] %s1065_s22  ;;  %p822_p7 = scmp.ge.s32.totalorder %s951_s16, 1 }
   0xf   : > { %p414_p8 = scmp.lt.s32.totalorder %s951_s16, 3 }
  0x11   : > { %p415_p9 = pnand %p822_p7, %p414_p8 }
  0x12   : > { %p459_p10 = scmp.lt.s32.totalorder (!%p415_p9), %s1050_s17, 1  ;;  %s1260_s0 = sld [smem:[#allocation9_spill]] (!%p415_p9) }
  0x13   : > { %418 = sbr.rel (%p415_p9) target bundleno = 1169 (0x491), region = 76  ;;  %s1261_s1 = sld [smem:[#allocation10_spill]] (!%p415_p9) }
  0x14   : > { %s456_s28 = sand.u32 (!%p415_p9), 1, %s943_s30   ;;  %s832_s19 = sshll.u32 (!%p415_p9), %s1050_s17, 3 }
  0x15   : > { %s755_s27 = scalar_lea.hbm (!%p415_p9), %s1249_s14, %s832_s19  ;;  %s745_s20 = scalar_lea.sflag (!%p415_p9), [#allocation4], %s456_s28 }
  0x18   : > { %s460_s25 = scalar_select %p459_p10, %s1050_s17, 1  ;;  %vm470_vm0 = vcmask 64512   ;;  %v468_v4 = vld [vmem:[%s1239_s4] sm:$0xff]  ;;  %vm553_vm1 = vcmask 261120   ;;  %v953_v21 = vmov 32.0   ;;  %v598_v33 = vld [vmem:[%s1243_s8 + $0x18] sm:$0xff] }
  0x19   : > { %v464_v0 = vld [vmem:[%s1261_s1] sm:$0xff]  ;;  %v465_v2 = vld [vmem:[%s1261_s1 + $0x8] sm:$0xff]  ;;  %881 = vrcp.f32 %v953_v21  ;;  %618 = vmatpush.msra.mxu3 %v598_v33  ;;  %v597_v34 = vld [vmem:[%s1243_s8 + $0x10] sm:$0xff]  ;;  %s759_s1 = sshll.u32 %s755_s27, 4  ;;  %s760_s1 = int_to_ptr.hbm [resolvable:$true] %s759_s1 }
  0x1a   : > { %s824_s26 = sshll.u32 %s460_s25, 3  ;;  %v469_v5 = vld [vmem:[%s1240_s5] sm:$0xff]  ;;  %v596_v35 = vld [vmem:[%s1243_s8 + $0x8] sm:$0xff]  ;;  %v685_v52 = vld [vmem:[%s1245_s10 + $0x78] sm:$0xff]  ;;  %s903_s21 = sshra.s32 %s760_s1, 4  ;;  %s904_s21 = int_to_ptr.hbm [resolvable:$true] %s903_s21 }
  0x1b   : > { %s462_s18 = scalar_lea.vmem %s1260_s0, %s824_s26  ;;  %v466_v13 = vld [vmem:[%s1237_s2] sm:$0xff]  ;;  %619 = vmatpush.msra.mxu3 %v597_v34  ;;  %690 = vmatpush.msra.mxu0 %v685_v52  ;;  %v684_v53 = vld [vmem:[%s1245_s10 + $0x70] sm:$0xff]  ;;  %v683_v54 = vld [vmem:[%s1245_s10 + $0x68] sm:$0xff]  ;;  %s905_s19 = scalar_lea.hbm %s904_s21, 8 }
  0x1c   : > { %v463_v1 = vld [vmem:[%s462_s18] sm:$0xff]  ;;  %v681_v57 = vld [vmem:[%s1245_s10 + $0x58] sm:$0xff]  ;;  %v680_v59 = vld [vmem:[%s1245_s10 + $0x50] sm:$0xff]  ;;  %s823_s18 = sshll.u32 %s456_s28, 3  ;;  %p906_p11 = scmp.ne.s32.totalorder %s904_s21, %s905_s19 }
  0x1d   : > { %492 = vmatpush.msra.mxu1 %v463_v1  ;;  %v467_v14 = vld [vmem:[%s1238_s3] sm:$0xff]  ;;  %620 = vmatpush.msra.mxu3 %v596_v35  ;;  %v679_v61 = vld [vmem:[%s1245_s10 + $0x48] sm:$0xff]  ;;  %s458_s0 = scalar_lea.vmem [#allocation3], %s823_s18  ;;  %s909_s18 = scalar_lea.hbm %s1249_s14, 16 }
  0x1e   : > { %825 = vmatmul.msk.f32.vlgmr.msra.gmra.mxu1 %vm470_vm0, %v464_v0  ;;  %v595_v36 = vld [vmem:[%s1243_s8] sm:$0xff]  ;;  %691 = vmatpush.msra.mxu0 %v684_v53  ;;  %s757_s17 = sshll.u32 %s458_s0, 4  ;;  %p907_p12 = pnand %p906_p11, %p1067_p5  ;;  %s758_s17 = int_to_ptr.vmem [resolvable:$true] %s757_s17 }
  0x1f   : > { %v882_v22 = vpop.eup %881  ;;  %621 = vmatpush.msra.mxu3 %v595_v36  ;;  %v875_v46 = vld [vmem:[%s1241_s6] ss:$0 sm:$0xff]  ;;  %p910_p0 = scmp.lt.s32.totalorder %s904_s21, %s1249_s14  ;;  %p911_p1 = scmp.lt.s32.totalorder %s909_s18, %s905_s19 }
  0x20   : > { %v562_v23 = vmul.f32 32.0, %v882_v22  ;;  %vm566_vm2 = vweird.f32 %v882_v22  ;;  %v876_v49 = vld [vmem:[%s1242_s7] ss:$0 sm:$0xff]  ;;  %692 = vmatpush.msra.mxu0 %v683_v54  ;;  %p908_p13 = pneg %p907_p12 }
  0x21   : > { %v877_v55 = vld [vmem:[%s1244_s9] ss:$0 sm:$0xff]  ;;  %p912_p2 = por %p911_p1, %p910_p0 }
  0x22   : > { %v563_v24 = vsub.f32 1.0, %v562_v23  ;;  %v682_v56 = vld [vmem:[%s1245_s10 + $0x60] sm:$0xff] }
  0x23   : > { %693 = vmatpush.msra.mxu0 %v682_v56  ;;  %v678_v63 = vld [vmem:[%s1245_s10 + $0x40] sm:$0xff]  ;;  %p913_p3 = pnand %p912_p2, %p908_p13 }
  0x24   : > { %v564_v25 = vmul.f32 %v882_v22, %v563_v24 }
  0x25   : > { %694 = vmatpush.msra.mxu0 %v681_v57 }
  0x26   : > { %826 = vmatmul.msk.f32.gmra.mxu1 %vm470_vm0, %v465_v2  ;;  %v565_v26 = vadd.f32 %v882_v22, %v564_v25 }
  0x27   : > { %695 = vmatpush.msra.mxu0 %v680_v59 }
  0x28   : > { %v1106_v27 = vsel %vm566_vm2, %v882_v22, %v565_v26 }
  0x29   : > { %696 = vmatpush.msra.mxu0 %v679_v61 }
  0x2b   : > { %697 = vmatpush.msra.mxu0 %v678_v63 }
  0x9b   : > { %v494_v3 = vpop.f32.mrf.mxu1 }
  0x9c   : > { %v500_v7 = vmul.f32 %v494_v3, %v468_v4  ;;  %v503_v8 = vmul.f32 %v494_v3, %v469_v5  ;;  %v676_v3 = vld [vmem:[%s1245_s10 + $0x30] sm:$0xff] }
  0xa3   : > { %v497_v6 = vpop.f32.mrf.mxu1 }
  0xa4   : > { %v501_v9 = vmul.f32 %v497_v6, %v469_v5  ;;  %v504_v10 = vmul.f32 %v497_v6, %v468_v4  ;;  %v675_v6 = vld [vmem:[%s1245_s10 + $0x28] sm:$0xff] }
  0xa6   : > { %v505_v11 = vadd.f32 %v504_v10, %v503_v8  ;;  %v502_v12 = vsub.f32 %v500_v7, %v501_v9  ;;  %v674_v9 = vld [vmem:[%s1245_s10 + $0x20] sm:$0xff] }
  0xa8   : > { %524 = vmatpush.msrb.mxu1 %v505_v11  ;;  %547 = vmatpush.msra.mxu2 %v502_v12  ;;  %v673_v12 = vld [vmem:[%s1245_s10 + $0x18] sm:$0xff] }
  0xa9   : > { %828 = vmatmul.msk.f32.vlgmr.msra.gmra.mxu2 %vm470_vm0, %v466_v13  ;;  %827 = vmatmul.msk.f32.vlgmr.msrb.gmra.mxu1 %vm470_vm0, %v467_v14 }
 0x126   : > { %v526_v15 = vpop.f32.mrf.mxu1 }
 0x12c   : > { %v549_v16 = vpop.f32.mrf.mxu2 }
 0x12d   : > { %v550_v17 = vadd.f32 %v549_v16, %v526_v15  ;;  %v672_v15 = vld [vmem:[%s1245_s10 + $0x10] sm:$0xff] }
 0x12f   : > { %v552_v18 = vadd.f32 %v550_v17, %v463_v1  ;;  %v677_v1 = vld [vmem:[%s1245_s10 + $0x38] sm:$0xff]  ;;  %v671_v17 = vld [vmem:[%s1245_s10 + $0x8] sm:$0xff] }
 0x130   : > { %698 = vmatpush.msra.mxu0 %v677_v1 }
 0x131   : > { %554 = vst.msk [vmem:[#allocation2] sm:$0xff] %vm553_vm1, %v552_v18 }
 0x132   : > { %699 = vmatpush.msra.mxu0 %v676_v3 }
 0x134   : > { %700 = vmatpush.msra.mxu0 %v675_v6 }
 0x136   : > { %701 = vmatpush.msra.mxu0 %v674_v9 }
 0x138   : > { %v555_v19 = vld [vmem:[#allocation2] sm:$0xff]  ;;  %702 = vmatpush.msra.mxu0 %v673_v12 }
 0x139   : > { %v558_v20 = vsel %vm553_vm1, %v555_v19, 0.0 }
 0x13a   : > { %559 = vadd.xlane.f32.xlu0 %v558_v20  ;;  %703 = vmatpush.msra.mxu0 %v672_v15  ;;  %v670_v20 = vld [vmem:[%s1245_s10] sm:$0xff] }
 0x13c   : > { %704 = vmatpush.msra.mxu0 %v671_v17 }
 0x13e   : > { %705 = vmatpush.msra.mxu0 %v670_v20 }
 0x1ad   : > { %v560_v28 = vpop.xlane.xlu0 %559 }
 0x1ae   : > { %v568_v29 = vmul.f32 %v1106_v27, %v560_v28 }
 0x1b0   : > { %v569_v30 = vsub.f32 %v555_v19, %v568_v29 }
 0x1b2   : > { %v570_v31 = vmul.f32 %v569_v30, %v569_v30 }
 0x1b4   : > { %v571_v32 = vsel %vm553_vm1, %v570_v31, 0.0 }
 0x1b5   : > { %572 = vadd.xlane.f32.xlu0 %v571_v32 }
 0x228   : > { %v573_v37 = vpop.xlane.xlu0 %572 }
 0x229   : > { %v574_v38 = vmul.f32 %v573_v37, %v1106_v27 }
 0x22b   : > { %v575_v39 = vadd.f32 1e-12, %v574_v38 }
 0x22d   : > { %883 = vrsqrt.f32 %v575_v39  ;;  %vm582_vm4 = vweird.f32 %v575_v39 }
 0x233   : > { %v884_v40 = vpop.eup %883 }
 0x234   : > { %v577_v41 = vmul.f32 %v884_v40, %v575_v39  ;;  %vm583_vm3 = vweird.f32 %v884_v40 }
 0x235   : > { %vm584_vm5 = vmor %vm582_vm4, %vm583_vm3 }
 0x236   : > { %v578_v42 = vmul.f32 %v884_v40, %v577_v41 }
 0x238   : > { %v579_v43 = vmul.f32 0.5, %v578_v42 }
 0x23a   : > { %v580_v44 = vsub.f32 1.5, %v579_v43 }
 0x23c   : > { %v581_v45 = vmul.f32 %v884_v40, %v580_v44 }
 0x23e   : > { %v585_v47 = vsel %vm584_vm5, %v884_v40, %v581_v45 }
 0x23f   : > { %v586_v48 = vmul.f32 %v585_v47, %v569_v30  ;;  %v878_v47 = vld [vmem:[%s1246_s11] ss:$0 sm:$0xff] }
 0x241   : > { %v590_v50 = vmul.f32 %v875_v46, %v586_v48 }
 0x243   : > { %v1129_v51 = vadd.f32 %v876_v49, %v590_v50 }
 0x245   : > { %829 = vmatmul.msk.f32.vlgmr.msra.gmra.mxu3 %vm553_vm1, %v1129_v51 }
 0x2c8   : > { %v623_v58 = vpop.f32.mrf.mxu3 }
 0x2c9   : > { %v1154_v60 = vadd.f32 %v877_v55, %v623_v58 }
 0x2cb   : > { %v626_v62 = vmul.f32 0.70710677, %v1154_v60 }
 0x2cd   : > { %v627_v0 = vmul.f32 %v626_v62, %v626_v62 }
 0x2cf   : > { %v628_v2 = vmin.f32 %v627_v0, 16.0 }
 0x2d1   : > { %v629_v4 = vmul.f32 2.1237322e-06, %v628_v2  ;;  %v640_v5 = vmul.f32 3.8918573e-05, %v628_v2 }
 0x2d3   : > { %v630_v7 = vadd.f32 0.00028619796, %v629_v4  ;;  %v641_v8 = vadd.f32 0.001143296, %v640_v5  ;;  %v880_v4 = vld [vmem:[%s1248_s13] ss:$0 sm:$0xff] }
 0x2d5   : > { %v631_v10 = vmul.f32 %v630_v7, %v628_v2  ;;  %v642_v11 = vmul.f32 %v641_v8, %v628_v2 }
 0x2d7   : > { %v643_v13 = vadd.f32 0.014752088, %v642_v11  ;;  %v632_v14 = vadd.f32 0.0036580483, %v631_v10 }
 0x2d9   : > { %v644_v16 = vmul.f32 %v643_v13, %v628_v2  ;;  %v633_v19 = vmul.f32 %v632_v14, %v628_v2 }
 0x2db   : > { %v645_v18 = vadd.f32 0.112945676, %v644_v16  ;;  %v634_v23 = vadd.f32 0.05243302, %v633_v19 }
 0x2dd   : > { %v646_v21 = vmul.f32 %v645_v18, %v628_v2  ;;  %v635_v26 = vmul.f32 %v634_v23, %v628_v2 }
 0x2df   : > { %v647_v22 = vadd.f32 0.4994258, %v646_v21  ;;  %v636_v28 = vadd.f32 0.18741608, %v635_v26 }
 0x2e1   : > { %v648_v24 = vmul.f32 %v647_v22, %v628_v2  ;;  %v637_v30 = vmul.f32 %v636_v28, %v628_v2  ;;  %v879_v2 = vld [vmem:[%s1247_s12] ss:$0 sm:$0xff] }
 0x2e3   : > { %v649_v25 = vadd.f32 1.0, %v648_v24  ;;  %v638_v34 = vadd.f32 1.1283791, %v637_v30 }
 0x2e5   : > { %885 = vrcp.f32 %v649_v25  ;;  %v661_v33 = vand.u32 2147483648, %v649_v25  ;;  %v659_v36 = vand.u32 2147483647, %v649_v25  ;;  %vm655_vm7 = vweird.f32 %v649_v25 }
 0x2e6   : > { %v639_v39 = vmul.f32 %v638_v34, %v626_v62 }
 0x2e7   : > { %v662_v38 = vor.u32 1.1754944e-38, %v661_v33  ;;  %vm660_vm9 = vcmp.eq.f32.partialorder %v659_v36, 8.507059e+37 }
 0x2eb   : > { %v886_v29 = vpop.eup %885 }
 0x2ec   : > { %v651_v31 = vmul.f32 %v886_v29, %v649_v25  ;;  %vm656_vm6 = vweird.f32 %v886_v29 }
 0x2ed   : > { %vm657_vm8 = vmor %vm655_vm7, %vm656_vm6 }
 0x2ee   : > { %v652_v32 = vsub.f32 1.0, %v651_v31 }
 0x2f0   : > { %v653_v35 = vmul.f32 %v886_v29, %v652_v32 }
 0x2f2   : > { %v654_v37 = vadd.f32 %v886_v29, %v653_v35 }
 0x2f4   : > { %v658_v40 = vsel %vm657_vm8, %v886_v29, %v654_v37 }
 0x2f5   : > { %v663_v41 = vsel %vm660_vm9, %v662_v38, %v658_v40 }
 0x2f6   : > { %v664_v42 = vmul.f32 %v663_v41, %v639_v39 }
 0x2f8   : > { %v830_v43 = vclamps-f32 %v664_v42, 1.0 }
 0x2fa   : > { %v667_v44 = vadd.f32 1.0, %v830_v43 }
 0x2fc   : > { %v668_v45 = vmul.f32 0.5, %v667_v44 }
 0x2fe   : > { %v669_v46 = vmul.f32 %v668_v45, %v1154_v60 }
 0x300   : > { %706 = vmatmul.f32.vlgmr.msra.gmra.mxu0 %v669_v46 }
 0x37d   : > { %v707_v48 = vpop.f32.mrf.mxu0 }
 0x37e   : > { %v708_v49 = vadd.f32 %v878_v47, %v707_v48 }
 0x380   : > { %v710_v50 = vadd.f32 %v708_v49, %v1129_v51 }
 0x382   : > { %v713_v52 = vsel %vm553_vm1, %v710_v50, 0.0 }
 0x383   : > { %714 = vadd.xlane.f32.xlu1 %v713_v52 }
 0x3f6   : > { %v715_v53 = vpop.xlane.xlu1 %714 }
 0x3f7   : > { %v716_v54 = vmul.f32 %v715_v53, %v1106_v27 }
 0x3f9   : > { %v717_v55 = vsub.f32 %v710_v50, %v716_v54 }
 0x3fb   : > { %v718_v56 = vmul.f32 %v717_v55, %v717_v55 }
 0x3fd   : > { %v719_v57 = vsel %vm553_vm1, %v718_v56, 0.0 }
 0x3fe   : > { %720 = vadd.xlane.f32.xlu1 %v719_v57 }
 0x471   : > { %v721_v58 = vpop.xlane.xlu1 %720 }
 0x472   : > { %v722_v59 = vmul.f32 %v721_v58, %v1106_v27 }
 0x474   : > { %v723_v60 = vadd.f32 1e-12, %v722_v59 }
 0x476   : > { %887 = vrsqrt.f32 %v723_v60  ;;  %vm730_vm11 = vweird.f32 %v723_v60 }
 0x47c   : > { %v888_v61 = vpop.eup %887 }
 0x47d   : > { %v725_v51 = vmul.f32 %v888_v61, %v723_v60  ;;  %vm731_vm10 = vweird.f32 %v888_v61 }
 0x47e   : > { %vm732_vm12 = vmor %vm730_vm11, %vm731_vm10 }
 0x47f   : > { %v726_v62 = vmul.f32 %v888_v61, %v725_v51 }
 0x481   : > { %v727_v63 = vmul.f32 0.5, %v726_v62 }
 0x483   : > { %v728_v0 = vsub.f32 1.5, %v727_v63 }
 0x485   : > { %v729_v1 = vmul.f32 %v888_v61, %v728_v0 }
 0x487   : > { %v733_v27 = vsel %vm732_vm12, %v888_v61, %v729_v1 }
 0x488   : > { %v734_v3 = vmul.f32 %v733_v27, %v717_v55 }
 0x48a   : > { %v738_v5 = vmul.f32 %v879_v2, %v734_v3 }
 0x48c   : > { %v742_v6 = vadd.f32 %v880_v4, %v738_v5 }
 0x48e   : > { %743 = vst.msk [vmem:[%s458_s0] sm:$0xff] %vm553_vm1, %v742_v6 }
 0x48f   : > { %916 = shalt.err (!%p913_p3)
}
 0x490   : > { %835 = dma.vmem_to_hbm [thread:$0]  (%p1067_p5), %s758_s17, 128, %s760_s1, %s745_s20  }
 0x491 PF: > { %p841_p4 = scmp.ge.s32.totalorder %s951_s16, 2  ;;  %s771_s0 = sand.u32 1, %s939_s29  }
 0x492   : > { %s772_s28 = scalar_lea.sflag [#allocation4], %s771_s0 }
 0x493   : > { %p838_p7 = pnand %p841_p4, %p1071_p6 }
 0x495   : > { %p839_p8 = pneg %p838_p7 }
 0x497   : > { %934 = dma.done.wait (%p839_p8), %s772_s28, 128  }
 0x498   : > { %936 = vsyncadd (%p839_p8), %s772_s28, 4294967168  ;;  %s1262_s16 = sld [smem:[#allocation7_spill]]  ;;  %s1265_s29 = smov %s943_s30 }
 0x499   : > { %s1263_s22 = sld [smem:[#allocation6_spill]] }
 0x49a   : > { %s1264_s15 = sld [smem:[#allocation8_spill]] }
 0x49e   : > { %p24_p9 = scmp.ge.s32.totalorder %s1262_s16, 4  }
 0x49f   : > { %s1266_s30 = smov %s1263_s22 }
 0x4a0   :  { %26 = sbr.rel (!%p24_p9) target bundleno = 6 (0x6), region = 111 }
 0x4a5   :  { %778 = vsyncpa [#allocation4], 1 }
 0x4a6   :  { %780 = vsyncpa [#allocation4 + $0x1], 1 }

</bundles_post_ra>
